<compile_context>
chip_gen: v7x
topology: tpu7x:2x2x1
jax: 0.10.0
libtpu: 0.0.40
codegen_flags: <defaults>
</compile_context>

<pallas_src>
import jax
import jax.numpy as jnp
from jax.experimental import pallas as pl
from jax.experimental.pallas import tpu as pltpu


def get_valid_groups(channels, requested_groups):
    if channels <= 0 or requested_groups <= 0:
        return 1
    for g in range(min(channels, requested_groups), 0, -1):
        if channels % g == 0:
            return g
    return 1


# ---------------------------------------------------------------------------
# Kernel
# ---------------------------------------------------------------------------
def _resblock_kernel(x_ref, temb_ref, g1_ref, b1_ref, magg_in_ref, w1_ref,
                     g2_ref, b2_ref, magg_out_ref, wt_ref, bt_ref, w2_ref,
                     wr_ref, gr_ref, br_ref, o_ref):
    eps = 1e-5
    x = x_ref[0]                         # (H, W*Cin), f32, lane-packed
    WCout = o_ref.shape[-1]              # W*Cout

    def silu(v):
        return v * jax.nn.sigmoid(v)

    def row_shift_down(h):               # out[y] = h[y-1], zero at y=0
        z = jnp.zeros((1, h.shape[1]), jnp.float32)
        return jnp.concatenate([z, h[:-1, :]], axis=0)

    def row_shift_up(h):                 # out[y] = h[y+1], zero at y=H-1
        z = jnp.zeros((1, h.shape[1]), jnp.float32)
        return jnp.concatenate([h[1:, :], z], axis=0)

    def conv3x3(h, w_ref):
        # w_ref: (3, W*C_in, W*C_out) banded weights; one matmul per kernel row.
        return (jnp.dot(row_shift_down(h), w_ref[0],
                        preferred_element_type=jnp.float32)
                + jnp.dot(h, w_ref[1], preferred_element_type=jnp.float32)
                + jnp.dot(row_shift_up(h), w_ref[2],
                          preferred_element_type=jnp.float32))

    # ---- GroupNorm(in) -> SiLU  (stats stacked into one dot)
    s1 = jnp.sum(x, axis=0, keepdims=True)
    ss1 = jnp.sum(x * x, axis=0, keepdims=True)
    ag1 = jnp.dot(jnp.concatenate([s1, ss1], axis=0), magg_in_ref[...],
                  preferred_element_type=jnp.float32)        # (2, W*Cin)
    mean1 = ag1[0:1, :]
    var1 = ag1[1:2, :] - mean1 * mean1                       # biased variance
    h1 = silu((x - mean1) * jax.lax.rsqrt(var1 + eps)
              * g1_ref[...] + b1_ref[...])

    # ---- conv1 (3x3, no bias)
    c1 = conv3x3(h1, w1_ref)                                 # (H, W*Cout)

    # ---- residual branch: 1x1 conv (block-diagonal matmul, no bias)
    res = jnp.dot(x, wr_ref[...], preferred_element_type=jnp.float32)

    # ---- GroupNorm(out) for main + residual branch: one stacked stats dot
    st = jnp.concatenate([
        jnp.sum(c1, axis=0, keepdims=True),
        jnp.sum(c1 * c1, axis=0, keepdims=True),
        jnp.sum(res, axis=0, keepdims=True),
        jnp.sum(res * res, axis=0, keepdims=True)], axis=0)  # (4, W*Cout)
    ag = jnp.dot(st, magg_out_ref[...], preferred_element_type=jnp.float32)
    mean2 = ag[0:1, :]
    var2 = ag[1:2, :] - mean2 * mean2
    meanr = ag[2:3, :]
    varr = ag[3:4, :] - meanr * meanr

    h2 = silu((c1 - mean2) * jax.lax.rsqrt(var2 + eps)
              * g2_ref[...] + b2_ref[...])
    resn = (res - meanr) * jax.lax.rsqrt(varr + eps) * gr_ref[...] + br_ref[...]

    # ---- time conditioning: SiLU -> Linear (weights pre-tiled to packed lanes)
    te = temb_ref[0]                                         # (1, T)
    tp = jnp.dot(silu(te), wt_ref[...],
                 preferred_element_type=jnp.float32) + bt_ref[...]
    scale = tp[:, :WCout]                                    # (1, W*Cout)
    shift = tp[:, WCout:]
    h2 = h2 * (scale + 1.0) + shift

    # Dropout is identity at inference.
    # TODO(synk): training-mode dropout (pltpu PRNG masking) not implemented.

    # ---- conv2 (3x3, no bias)
    c2 = conv3x3(h2, w2_ref)

    o_ref[0] = (c2 + resn).astype(o_ref.dtype)               # lane-dense store


# ---------------------------------------------------------------------------
# Wrapper (NCHW at the boundary; lane-packed (H, W*C) inside the kernel)
# ---------------------------------------------------------------------------
def residual_block_forward(x_nchw, time_emb, params):
    x = jnp.transpose(x_nchw, (0, 2, 3, 1)).astype(jnp.float32)   # NCHW -> NHWC
    B, H, W, Cin = x.shape
    Cout = params["w1"].shape[-1]
    T = time_emb.shape[-1]
    WCin, WCout = W * Cin, W * Cout

    x_p = x.reshape(B, H, WCin)                       # lane-packed input
    temb = time_emb.astype(jnp.float32).reshape(B, 1, T)

    def banded(w):
        # (3, 3, ci, co) HWIO -> (3, W*ci, W*co): x-shift + channel-mix folded
        # into a block-banded matrix per kernel row.
        kh, kw, ci, co = w.shape
        mats = []
        for dy in range(kh):
            m = jnp.zeros((W * ci, W * co), jnp.float32)
            for dx in range(kw):
                m = m + jnp.kron(jnp.eye(W, k=1 - dx, dtype=jnp.float32),
                                 w[dy, dx].astype(jnp.float32))
            mats.append(m)
        return jnp.stack(mats)

    def gn_agg(C, G):
        # Packed aggregation matrix: (1, W*C) sums @ this -> per-position group
        # mean replicated across x (PyTorch GroupNorm semantics, biased var).
        Cg = C // G
        gid = jnp.arange(C) // Cg
        small = (gid[:, None] == gid[None, :]).astype(jnp.float32) / float(H * W * Cg)
        return jnp.kron(jnp.ones((W, W), jnp.float32), small)

    def tile_row(v):                                  # (C,) -> (1, W*C)
        return jnp.tile(v.astype(jnp.float32).reshape(1, -1), (1, W))

    wt = params["wt"].astype(jnp.float32)             # (T, 2*Cout)
    bt = params["bt"].astype(jnp.float32)             # (2*Cout,)
    wt_p = jnp.concatenate([jnp.tile(wt[:, :Cout], (1, W)),
                            jnp.tile(wt[:, Cout:], (1, W))], axis=1)   # (T, 2*W*Cout)
    bt_p = jnp.concatenate([jnp.tile(bt[:Cout].reshape(1, -1), (1, W)),
                            jnp.tile(bt[Cout:].reshape(1, -1), (1, W))], axis=1)

    args = (
        x_p, temb,
        tile_row(params["gamma1"]), tile_row(params["beta1"]),
        gn_agg(Cin, params["g_in"]),
        banded(params["w1"]),
        tile_row(params["gamma2"]), tile_row(params["beta2"]),
        gn_agg(Cout, params["g_out"]),
        wt_p, bt_p,
        banded(params["w2"]),
        jnp.kron(jnp.eye(W, dtype=jnp.float32), params["wr"].astype(jnp.float32)),
        tile_row(params["gamma_r"]), tile_row(params["beta_r"]),
    )

    def full_spec(a):
        nd = a.ndim
        return pl.BlockSpec(a.shape, lambda b, _nd=nd: (0,) * _nd)

    in_specs = [pl.BlockSpec((1, H, WCin), lambda b: (b, 0, 0)),
                pl.BlockSpec((1, 1, T), lambda b: (b, 0, 0))]
    in_specs += [full_spec(a) for a in args[2:]]
    out_spec = pl.BlockSpec((1, H, WCout), lambda b: (b, 0, 0))

    out = pl.pallas_call(
        _resblock_kernel,
        out_shape=jax.ShapeDtypeStruct((B, H, WCout), jnp.float32),
        grid_spec=pltpu.PrefetchScalarGridSpec(
            num_scalar_prefetch=0,
            grid=(B,),
            in_specs=in_specs,
            out_specs=out_spec,
        ),
        compiler_params=pltpu.CompilerParams(
            dimension_semantics=("parallel",),        # batch iters independent
            vmem_limit_bytes=32 * 1024 * 1024),
    )(*args)
    return jnp.transpose(out.reshape(B, H, W, Cout), (0, 3, 1, 2))  # -> NCHW


# ---------------------------------------------------------------------------
# Pure-JAX reference (identical semantics)
# ---------------------------------------------------------------------------
def ref_forward(x_nchw, time_emb, params):
    x = jnp.transpose(x_nchw, (0, 2, 3, 1)).astype(jnp.float32)
    Cout = params["w1"].shape[-1]

    def gn(v, gamma, beta, G, eps=1e-5):
        b_, h_, w_, c_ = v.shape
        vg = v.reshape(b_, h_, w_, G, c_ // G)
        mean = vg.mean(axis=(1, 2, 4), keepdims=True)
        var = ((vg - mean) ** 2).mean(axis=(1, 2, 4), keepdims=True)
        vn = ((vg - mean) / jnp.sqrt(var + eps)).reshape(b_, h_, w_, c_)
        return vn * gamma.reshape(1, 1, 1, -1) + beta.reshape(1, 1, 1, -1)

    def conv(v, w):
        return jax.lax.conv_general_dilated(
            v, w, window_strides=(1, 1), padding=((1, 1), (1, 1)),
            dimension_numbers=("NHWC", "HWIO", "NHWC"))

    silu = lambda u: u * jax.nn.sigmoid(u)

    h = silu(gn(x, params["gamma1"], params["beta1"], params["g_in"]))
    h = conv(h, params["w1"])
    h = silu(gn(h, params["gamma2"], params["beta2"], params["g_out"]))
    tp = silu(time_emb.astype(jnp.float32)) @ params["wt"] + params["bt"]
    scale = tp[:, :Cout][:, None, None, :]
    shift = tp[:, Cout:][:, None, None, :]
    h = h * (scale + 1.0) + shift
    h = conv(h, params["w2"])
    res = jnp.einsum("bhwc,cd->bhwd", x, params["wr"])
    res = gn(res, params["gamma_r"], params["beta_r"], params["g_out"])
    return jnp.transpose(h + res, (0, 3, 1, 2))


if __name__ == "__main__":
    B, Cin, Cout, H, W = 2, 4, 8, 16, 16
    T = 32                      # time_emb_dim
    num_groups = 32
    g_in = get_valid_groups(Cin, num_groups)    # -> 4
    g_out = get_valid_groups(Cout, num_groups)  # -> 8

    key = jax.random.PRNGKey(0)
    ks = jax.random.split(key, 13)
    params = {
        "g_in": g_in, "g_out": g_out,
        "gamma1": 1.0 + 0.1 * jax.random.normal(ks[0], (Cin,), jnp.float32),
        "beta1": 0.1 * jax.random.normal(ks[1], (Cin,), jnp.float32),
        "w1": 0.2 * jax.random.normal(ks[2], (3, 3, Cin, Cout), jnp.float32),
        "gamma2": 1.0 + 0.1 * jax.random.normal(ks[3], (Cout,), jnp.float32),
        "beta2": 0.1 * jax.random.normal(ks[4], (Cout,), jnp.float32),
        "wt": 0.2 * jax.random.normal(ks[5], (T, 2 * Cout), jnp.float32),
        "bt": 0.1 * jax.random.normal(ks[6], (2 * Cout,), jnp.float32),
        "w2": 0.2 * jax.random.normal(ks[7], (3, 3, Cout, Cout), jnp.float32),
        "wr": 0.2 * jax.random.normal(ks[8], (Cin, Cout), jnp.float32),
        "gamma_r": 1.0 + 0.1 * jax.random.normal(ks[9], (Cout,), jnp.float32),
        "beta_r": 0.1 * jax.random.normal(ks[10], (Cout,), jnp.float32),
    }
    x = jax.random.normal(ks[11], (B, Cin, H, W), jnp.float32)
    temb = jax.random.normal(ks[12], (B, T), jnp.float32)

    out = jax.block_until_ready(residual_block_forward(x, temb, params))
    ref = jax.block_until_ready(ref_forward(x, temb, params))

    assert out.shape == (B, Cout, H, W), out.shape
    max_err = float(jnp.max(jnp.abs(out - ref)))
    assert max_err < 2e-3, f"max abs error vs reference: {max_err}"
    print("KERNEL_OK")
</pallas_src>

<mosaic_0001>
module attributes {stable_mosaic.version = 11 : i64} {
  func.func @_resblock_kernel(%arg0: i32, %arg1: memref<1x16x64xf32, #tpu.memory_space<vmem>>, %arg2: memref<1x1x32xf32, #tpu.memory_space<vmem>>, %arg3: memref<1x64xf32, #tpu.memory_space<vmem>>, %arg4: memref<1x64xf32, #tpu.memory_space<vmem>>, %arg5: memref<64x64xf32, #tpu.memory_space<vmem>>, %arg6: memref<3x64x128xf32, #tpu.memory_space<vmem>>, %arg7: memref<1x128xf32, #tpu.memory_space<vmem>>, %arg8: memref<1x128xf32, #tpu.memory_space<vmem>>, %arg9: memref<128x128xf32, #tpu.memory_space<vmem>>, %arg10: memref<32x256xf32, #tpu.memory_space<vmem>>, %arg11: memref<1x256xf32, #tpu.memory_space<vmem>>, %arg12: memref<3x128x128xf32, #tpu.memory_space<vmem>>, %arg13: memref<64x128xf32, #tpu.memory_space<vmem>>, %arg14: memref<1x128xf32, #tpu.memory_space<vmem>>, %arg15: memref<1x128xf32, #tpu.memory_space<vmem>>, %arg16: memref<1x16x128xf32, #tpu.memory_space<vmem>>) attributes {dimension_semantics = [#tpu.dimension_semantics<parallel>], iteration_bounds = array<i64: 2>, scalar_prefetch = 0 : i64, scratch_operands = 0 : i64, tpu.core_type = #tpu.core_type<tc>, window_params = [{transform_indices = @transform_0, window_bounds = array<i64: 1, 16, 64>}, {transform_indices = @transform_1, window_bounds = array<i64: 1, 1, 32>}, {pipeline_mode = #tpu.pipeline_mode<synchronous>, transform_indices = @transform_2, window_bounds = array<i64: 1, 64>}, {pipeline_mode = #tpu.pipeline_mode<synchronous>, transform_indices = @transform_3, window_bounds = array<i64: 1, 64>}, {pipeline_mode = #tpu.pipeline_mode<synchronous>, transform_indices = @transform_4, window_bounds = array<i64: 64, 64>}, {pipeline_mode = #tpu.pipeline_mode<synchronous>, transform_indices = @transform_5, window_bounds = array<i64: 3, 64, 128>}, {pipeline_mode = #tpu.pipeline_mode<synchronous>, transform_indices = @transform_6, window_bounds = array<i64: 1, 128>}, {pipeline_mode = #tpu.pipeline_mode<synchronous>, transform_indices = @transform_7, window_bounds = array<i64: 1, 128>}, {pipeline_mode = #tpu.pipeline_mode<synchronous>, transform_indices = @transform_8, window_bounds = array<i64: 128, 128>}, {pipeline_mode = #tpu.pipeline_mode<synchronous>, transform_indices = @transform_9, window_bounds = array<i64: 32, 256>}, {pipeline_mode = #tpu.pipeline_mode<synchronous>, transform_indices = @transform_10, window_bounds = array<i64: 1, 256>}, {pipeline_mode = #tpu.pipeline_mode<synchronous>, transform_indices = @transform_11, window_bounds = array<i64: 3, 128, 128>}, {pipeline_mode = #tpu.pipeline_mode<synchronous>, transform_indices = @transform_12, window_bounds = array<i64: 64, 128>}, {pipeline_mode = #tpu.pipeline_mode<synchronous>, transform_indices = @transform_13, window_bounds = array<i64: 1, 128>}, {pipeline_mode = #tpu.pipeline_mode<synchronous>, transform_indices = @transform_14, window_bounds = array<i64: 1, 128>}, {transform_indices = @transform_15, window_bounds = array<i64: 1, 16, 128>}]} {
    %c0 = arith.constant 0 : index
    %c0_0 = arith.constant 0 : index
    %c0_1 = arith.constant 0 : index
    %0 = vector.load %arg1[%c0, %c0_0, %c0_1] : memref<1x16x64xf32, #tpu.memory_space<vmem>>, vector<1x16x64xf32>
    %1 = vector.shape_cast %0 : vector<1x16x64xf32> to vector<16x64xf32>
    %cst = arith.constant dense<0.000000e+00> : vector<64xf32>
    %2 = vector.multi_reduction <add>, %1, %cst [0] : vector<16x64xf32> to vector<64xf32>
    %3 = vector.shape_cast %2 : vector<64xf32> to vector<1x64xf32>
    %4 = arith.mulf %1, %1 : vector<16x64xf32>
    %cst_2 = arith.constant dense<0.000000e+00> : vector<64xf32>
    %5 = vector.multi_reduction <add>, %4, %cst_2 [0] : vector<16x64xf32> to vector<64xf32>
    %6 = vector.shape_cast %5 : vector<64xf32> to vector<1x64xf32>
    %7 = tpu.concatenate %3, %6 in 0 : vector<1x64xf32>, vector<1x64xf32> -> vector<2x64xf32>
    %c0_3 = arith.constant 0 : index
    %c0_4 = arith.constant 0 : index
    %8 = vector.load %arg5[%c0_3, %c0_4] : memref<64x64xf32, #tpu.memory_space<vmem>>, vector<64x64xf32>
    %cst_5 = arith.constant dense<0.000000e+00> : vector<2x64xf32>
    %9 = tpu.matmul %7, %8, %cst_5 {dimension_numbers = #tpu.dot_dimension_numbers<[1], [0], [0], [1], [0, 0, 1, 1], [], []>} : vector<2x64xf32>, vector<64x64xf32>, vector<2x64xf32> -> vector<2x64xf32>
    %10 = vector.extract_strided_slice %9 {offsets = [0, 0], sizes = [1, 64], strides = [1, 1]} : vector<2x64xf32> to vector<1x64xf32>
    %11 = vector.extract_strided_slice %9 {offsets = [1, 0], sizes = [1, 64], strides = [1, 1]} : vector<2x64xf32> to vector<1x64xf32>
    %12 = arith.mulf %10, %10 : vector<1x64xf32>
    %13 = arith.subf %11, %12 : vector<1x64xf32>
    %14 = vector.broadcast %10 : vector<1x64xf32> to vector<16x64xf32>
    %15 = arith.subf %1, %14 : vector<16x64xf32>
    %cst_6 = arith.constant 9.99999974E-6 : f32
    %16 = vector.broadcast %cst_6 : f32 to vector<1x64xf32>
    %17 = arith.addf %13, %16 : vector<1x64xf32>
    %18 = math.rsqrt %17 : vector<1x64xf32>
    %19 = vector.broadcast %18 : vector<1x64xf32> to vector<16x64xf32>
    %20 = arith.mulf %15, %19 : vector<16x64xf32>
    %c0_7 = arith.constant 0 : index
    %c0_8 = arith.constant 0 : index
    %21 = vector.load %arg3[%c0_7, %c0_8] : memref<1x64xf32, #tpu.memory_space<vmem>>, vector<1x64xf32>
    %22 = vector.broadcast %21 : vector<1x64xf32> to vector<16x64xf32>
    %23 = arith.mulf %20, %22 : vector<16x64xf32>
    %c0_9 = arith.constant 0 : index
    %c0_10 = arith.constant 0 : index
    %24 = vector.load %arg4[%c0_9, %c0_10] : memref<1x64xf32, #tpu.memory_space<vmem>>, vector<1x64xf32>
    %25 = vector.broadcast %24 : vector<1x64xf32> to vector<16x64xf32>
    %26 = arith.addf %23, %25 : vector<16x64xf32>
    %27 = arith.negf %26 : vector<16x64xf32>
    %28 = math.exp %27 : vector<16x64xf32>
    %cst_11 = arith.constant 1.000000e+00 : f32
    %29 = vector.broadcast %cst_11 : f32 to vector<16x64xf32>
    %30 = arith.addf %29, %28 : vector<16x64xf32>
    %31 = arith.divf %29, %30 : vector<16x64xf32>
    %32 = arith.mulf %26, %31 : vector<16x64xf32>
    %cst_12 = arith.constant 0.000000e+00 : f32
    %33 = vector.broadcast %cst_12 : f32 to vector<1x64xf32>
    %34 = vector.extract_strided_slice %32 {offsets = [0, 0], sizes = [15, 64], strides = [1, 1]} : vector<16x64xf32> to vector<15x64xf32>
    %35 = tpu.concatenate %33, %34 in 0 : vector<1x64xf32>, vector<15x64xf32> -> vector<16x64xf32>
    %c0_13 = arith.constant 0 : index
    %c0_14 = arith.constant 0 : index
    %c0_15 = arith.constant 0 : index
    %36 = vector.load %arg6[%c0_13, %c0_14, %c0_15] : memref<3x64x128xf32, #tpu.memory_space<vmem>>, vector<1x64x128xf32>
    %37 = vector.shape_cast %36 : vector<1x64x128xf32> to vector<64x128xf32>
    %cst_16 = arith.constant dense<0.000000e+00> : vector<16x128xf32>
    %38 = tpu.matmul %35, %37, %cst_16 {dimension_numbers = #tpu.dot_dimension_numbers<[1], [0], [0], [1], [0, 0, 1, 1], [], []>} : vector<16x64xf32>, vector<64x128xf32>, vector<16x128xf32> -> vector<16x128xf32>
    %c1 = arith.constant 1 : index
    %c0_17 = arith.constant 0 : index
    %c0_18 = arith.constant 0 : index
    %39 = vector.load %arg6[%c1, %c0_17, %c0_18] : memref<3x64x128xf32, #tpu.memory_space<vmem>>, vector<1x64x128xf32>
    %40 = vector.shape_cast %39 : vector<1x64x128xf32> to vector<64x128xf32>
    %cst_19 = arith.constant dense<0.000000e+00> : vector<16x128xf32>
    %41 = tpu.matmul %32, %40, %cst_19 {dimension_numbers = #tpu.dot_dimension_numbers<[1], [0], [0], [1], [0, 0, 1, 1], [], []>} : vector<16x64xf32>, vector<64x128xf32>, vector<16x128xf32> -> vector<16x128xf32>
    %42 = arith.addf %38, %41 : vector<16x128xf32>
    %cst_20 = arith.constant 0.000000e+00 : f32
    %43 = vector.broadcast %cst_20 : f32 to vector<1x64xf32>
    %44 = vector.extract_strided_slice %32 {offsets = [1, 0], sizes = [15, 64], strides = [1, 1]} : vector<16x64xf32> to vector<15x64xf32>
    %45 = tpu.concatenate %44, %43 in 0 : vector<15x64xf32>, vector<1x64xf32> -> vector<16x64xf32>
    %c2 = arith.constant 2 : index
    %c0_21 = arith.constant 0 : index
    %c0_22 = arith.constant 0 : index
    %46 = vector.load %arg6[%c2, %c0_21, %c0_22] : memref<3x64x128xf32, #tpu.memory_space<vmem>>, vector<1x64x128xf32>
    %47 = vector.shape_cast %46 : vector<1x64x128xf32> to vector<64x128xf32>
    %cst_23 = arith.constant dense<0.000000e+00> : vector<16x128xf32>
    %48 = tpu.matmul %45, %47, %cst_23 {dimension_numbers = #tpu.dot_dimension_numbers<[1], [0], [0], [1], [0, 0, 1, 1], [], []>} : vector<16x64xf32>, vector<64x128xf32>, vector<16x128xf32> -> vector<16x128xf32>
    %49 = arith.addf %42, %48 : vector<16x128xf32>
    %c0_24 = arith.constant 0 : index
    %c0_25 = arith.constant 0 : index
    %50 = vector.load %arg13[%c0_24, %c0_25] : memref<64x128xf32, #tpu.memory_space<vmem>>, vector<64x128xf32>
    %cst_26 = arith.constant dense<0.000000e+00> : vector<16x128xf32>
    %51 = tpu.matmul %1, %50, %cst_26 {dimension_numbers = #tpu.dot_dimension_numbers<[1], [0], [0], [1], [0, 0, 1, 1], [], []>} : vector<16x64xf32>, vector<64x128xf32>, vector<16x128xf32> -> vector<16x128xf32>
    %cst_27 = arith.constant dense<0.000000e+00> : vector<128xf32>
    %52 = vector.multi_reduction <add>, %49, %cst_27 [0] : vector<16x128xf32> to vector<128xf32>
    %53 = vector.shape_cast %52 : vector<128xf32> to vector<1x128xf32>
    %54 = arith.mulf %49, %49 : vector<16x128xf32>
    %cst_28 = arith.constant dense<0.000000e+00> : vector<128xf32>
    %55 = vector.multi_reduction <add>, %54, %cst_28 [0] : vector<16x128xf32> to vector<128xf32>
    %56 = vector.shape_cast %55 : vector<128xf32> to vector<1x128xf32>
    %cst_29 = arith.constant dense<0.000000e+00> : vector<128xf32>
    %57 = vector.multi_reduction <add>, %51, %cst_29 [0] : vector<16x128xf32> to vector<128xf32>
    %58 = vector.shape_cast %57 : vector<128xf32> to vector<1x128xf32>
    %59 = arith.mulf %51, %51 : vector<16x128xf32>
    %cst_30 = arith.constant dense<0.000000e+00> : vector<128xf32>
    %60 = vector.multi_reduction <add>, %59, %cst_30 [0] : vector<16x128xf32> to vector<128xf32>
    %61 = vector.shape_cast %60 : vector<128xf32> to vector<1x128xf32>
    %62 = tpu.concatenate %53, %56, %58, %61 in 0 : vector<1x128xf32>, vector<1x128xf32>, vector<1x128xf32>, vector<1x128xf32> -> vector<4x128xf32>
    %c0_31 = arith.constant 0 : index
    %c0_32 = arith.constant 0 : index
    %63 = vector.load %arg9[%c0_31, %c0_32] : memref<128x128xf32, #tpu.memory_space<vmem>>, vector<128x128xf32>
    %cst_33 = arith.constant dense<0.000000e+00> : vector<4x128xf32>
    %64 = tpu.matmul %62, %63, %cst_33 {dimension_numbers = #tpu.dot_dimension_numbers<[1], [0], [0], [1], [0, 0, 1, 1], [], []>} : vector<4x128xf32>, vector<128x128xf32>, vector<4x128xf32> -> vector<4x128xf32>
    %65 = vector.extract_strided_slice %64 {offsets = [0, 0], sizes = [1, 128], strides = [1, 1]} : vector<4x128xf32> to vector<1x128xf32>
    %66 = vector.extract_strided_slice %64 {offsets = [1, 0], sizes = [1, 128], strides = [1, 1]} : vector<4x128xf32> to vector<1x128xf32>
    %67 = arith.mulf %65, %65 : vector<1x128xf32>
    %68 = arith.subf %66, %67 : vector<1x128xf32>
    %69 = vector.extract_strided_slice %64 {offsets = [2, 0], sizes = [1, 128], strides = [1, 1]} : vector<4x128xf32> to vector<1x128xf32>
    %70 = vector.extract_strided_slice %64 {offsets = [3, 0], sizes = [1, 128], strides = [1, 1]} : vector<4x128xf32> to vector<1x128xf32>
    %71 = arith.mulf %69, %69 : vector<1x128xf32>
    %72 = arith.subf %70, %71 : vector<1x128xf32>
    %73 = vector.broadcast %65 : vector<1x128xf32> to vector<16x128xf32>
    %74 = arith.subf %49, %73 : vector<16x128xf32>
    %cst_34 = arith.constant 9.99999974E-6 : f32
    %75 = vector.broadcast %cst_34 : f32 to vector<1x128xf32>
    %76 = arith.addf %68, %75 : vector<1x128xf32>
    %77 = math.rsqrt %76 : vector<1x128xf32>
    %78 = vector.broadcast %77 : vector<1x128xf32> to vector<16x128xf32>
    %79 = arith.mulf %74, %78 : vector<16x128xf32>
    %c0_35 = arith.constant 0 : index
    %c0_36 = arith.constant 0 : index
    %80 = vector.load %arg7[%c0_35, %c0_36] : memref<1x128xf32, #tpu.memory_space<vmem>>, vector<1x128xf32>
    %81 = vector.broadcast %80 : vector<1x128xf32> to vector<16x128xf32>
    %82 = arith.mulf %79, %81 : vector<16x128xf32>
    %c0_37 = arith.constant 0 : index
    %c0_38 = arith.constant 0 : index
    %83 = vector.load %arg8[%c0_37, %c0_38] : memref<1x128xf32, #tpu.memory_space<vmem>>, vector<1x128xf32>
    %84 = vector.broadcast %83 : vector<1x128xf32> to vector<16x128xf32>
    %85 = arith.addf %82, %84 : vector<16x128xf32>
    %86 = arith.negf %85 : vector<16x128xf32>
    %87 = math.exp %86 : vector<16x128xf32>
    %cst_39 = arith.constant 1.000000e+00 : f32
    %88 = vector.broadcast %cst_39 : f32 to vector<16x128xf32>
    %89 = arith.addf %88, %87 : vector<16x128xf32>
    %90 = arith.divf %88, %89 : vector<16x128xf32>
    %91 = arith.mulf %85, %90 : vector<16x128xf32>
    %92 = vector.broadcast %69 : vector<1x128xf32> to vector<16x128xf32>
    %93 = arith.subf %51, %92 : vector<16x128xf32>
    %cst_40 = arith.constant 9.99999974E-6 : f32
    %94 = vector.broadcast %cst_40 : f32 to vector<1x128xf32>
    %95 = arith.addf %72, %94 : vector<1x128xf32>
    %96 = math.rsqrt %95 : vector<1x128xf32>
    %97 = vector.broadcast %96 : vector<1x128xf32> to vector<16x128xf32>
    %98 = arith.mulf %93, %97 : vector<16x128xf32>
    %c0_41 = arith.constant 0 : index
    %c0_42 = arith.constant 0 : index
    %99 = vector.load %arg14[%c0_41, %c0_42] : memref<1x128xf32, #tpu.memory_space<vmem>>, vector<1x128xf32>
    %100 = vector.broadcast %99 : vector<1x128xf32> to vector<16x128xf32>
    %101 = arith.mulf %98, %100 : vector<16x128xf32>
    %c0_43 = arith.constant 0 : index
    %c0_44 = arith.constant 0 : index
    %102 = vector.load %arg15[%c0_43, %c0_44] : memref<1x128xf32, #tpu.memory_space<vmem>>, vector<1x128xf32>
    %103 = vector.broadcast %102 : vector<1x128xf32> to vector<16x128xf32>
    %104 = arith.addf %101, %103 : vector<16x128xf32>
    %c0_45 = arith.constant 0 : index
    %c0_46 = arith.constant 0 : index
    %c0_47 = arith.constant 0 : index
    %105 = vector.load %arg2[%c0_45, %c0_46, %c0_47] : memref<1x1x32xf32, #tpu.memory_space<vmem>>, vector<1x1x32xf32>
    %106 = vector.shape_cast %105 : vector<1x1x32xf32> to vector<1x32xf32>
    %107 = arith.negf %106 : vector<1x32xf32>
    %108 = math.exp %107 : vector<1x32xf32>
    %cst_48 = arith.constant 1.000000e+00 : f32
    %109 = vector.broadcast %cst_48 : f32 to vector<1x32xf32>
    %110 = arith.addf %109, %108 : vector<1x32xf32>
    %111 = arith.divf %109, %110 : vector<1x32xf32>
    %112 = arith.mulf %106, %111 : vector<1x32xf32>
    %c0_49 = arith.constant 0 : index
    %c0_50 = arith.constant 0 : index
    %113 = vector.load %arg10[%c0_49, %c0_50] : memref<32x256xf32, #tpu.memory_space<vmem>>, vector<32x256xf32>
    %cst_51 = arith.constant dense<0.000000e+00> : vector<1x256xf32>
    %114 = tpu.matmul %112, %113, %cst_51 {dimension_numbers = #tpu.dot_dimension_numbers<[1], [0], [0], [1], [0, 0, 1, 1], [], []>} : vector<1x32xf32>, vector<32x256xf32>, vector<1x256xf32> -> vector<1x256xf32>
    %c0_52 = arith.constant 0 : index
    %c0_53 = arith.constant 0 : index
    %115 = vector.load %arg11[%c0_52, %c0_53] : memref<1x256xf32, #tpu.memory_space<vmem>>, vector<1x256xf32>
    %116 = arith.addf %114, %115 : vector<1x256xf32>
    %117 = vector.extract_strided_slice %116 {offsets = [0, 0], sizes = [1, 128], strides = [1, 1]} : vector<1x256xf32> to vector<1x128xf32>
    %118 = vector.extract_strided_slice %116 {offsets = [0, 128], sizes = [1, 128], strides = [1, 1]} : vector<1x256xf32> to vector<1x128xf32>
    %cst_54 = arith.constant 1.000000e+00 : f32
    %119 = vector.broadcast %cst_54 : f32 to vector<1x128xf32>
    %120 = arith.addf %117, %119 : vector<1x128xf32>
    %121 = vector.broadcast %120 : vector<1x128xf32> to vector<16x128xf32>
    %122 = arith.mulf %91, %121 : vector<16x128xf32>
    %123 = vector.broadcast %118 : vector<1x128xf32> to vector<16x128xf32>
    %124 = arith.addf %122, %123 : vector<16x128xf32>
    %cst_55 = arith.constant 0.000000e+00 : f32
    %125 = vector.broadcast %cst_55 : f32 to vector<1x128xf32>
    %126 = vector.extract_strided_slice %124 {offsets = [0, 0], sizes = [15, 128], strides = [1, 1]} : vector<16x128xf32> to vector<15x128xf32>
    %127 = tpu.concatenate %125, %126 in 0 : vector<1x128xf32>, vector<15x128xf32> -> vector<16x128xf32>
    %c0_56 = arith.constant 0 : index
    %c0_57 = arith.constant 0 : index
    %c0_58 = arith.constant 0 : index
    %128 = vector.load %arg12[%c0_56, %c0_57, %c0_58] : memref<3x128x128xf32, #tpu.memory_space<vmem>>, vector<1x128x128xf32>
    %129 = vector.shape_cast %128 : vector<1x128x128xf32> to vector<128x128xf32>
    %cst_59 = arith.constant dense<0.000000e+00> : vector<16x128xf32>
    %130 = tpu.matmul %127, %129, %cst_59 {dimension_numbers = #tpu.dot_dimension_numbers<[1], [0], [0], [1], [0, 0, 1, 1], [], []>} : vector<16x128xf32>, vector<128x128xf32>, vector<16x128xf32> -> vector<16x128xf32>
    %c1_60 = arith.constant 1 : index
    %c0_61 = arith.constant 0 : index
    %c0_62 = arith.constant 0 : index
    %131 = vector.load %arg12[%c1_60, %c0_61, %c0_62] : memref<3x128x128xf32, #tpu.memory_space<vmem>>, vector<1x128x128xf32>
    %132 = vector.shape_cast %131 : vector<1x128x128xf32> to vector<128x128xf32>
    %cst_63 = arith.constant dense<0.000000e+00> : vector<16x128xf32>
    %133 = tpu.matmul %124, %132, %cst_63 {dimension_numbers = #tpu.dot_dimension_numbers<[1], [0], [0], [1], [0, 0, 1, 1], [], []>} : vector<16x128xf32>, vector<128x128xf32>, vector<16x128xf32> -> vector<16x128xf32>
    %134 = arith.addf %130, %133 : vector<16x128xf32>
    %cst_64 = arith.constant 0.000000e+00 : f32
    %135 = vector.broadcast %cst_64 : f32 to vector<1x128xf32>
    %136 = vector.extract_strided_slice %124 {offsets = [1, 0], sizes = [15, 128], strides = [1, 1]} : vector<16x128xf32> to vector<15x128xf32>
    %137 = tpu.concatenate %136, %135 in 0 : vector<15x128xf32>, vector<1x128xf32> -> vector<16x128xf32>
    %c2_65 = arith.constant 2 : index
    %c0_66 = arith.constant 0 : index
    %c0_67 = arith.constant 0 : index
    %138 = vector.load %arg12[%c2_65, %c0_66, %c0_67] : memref<3x128x128xf32, #tpu.memory_space<vmem>>, vector<1x128x128xf32>
    %139 = vector.shape_cast %138 : vector<1x128x128xf32> to vector<128x128xf32>
    %cst_68 = arith.constant dense<0.000000e+00> : vector<16x128xf32>
    %140 = tpu.matmul %137, %139, %cst_68 {dimension_numbers = #tpu.dot_dimension_numbers<[1], [0], [0], [1], [0, 0, 1, 1], [], []>} : vector<16x128xf32>, vector<128x128xf32>, vector<16x128xf32> -> vector<16x128xf32>
    %141 = arith.addf %134, %140 : vector<16x128xf32>
    %142 = arith.addf %141, %104 : vector<16x128xf32>
    %c0_69 = arith.constant 0 : index
    %c0_70 = arith.constant 0 : index
    %c0_71 = arith.constant 0 : index
    %143 = vector.load %arg16[%c0_69, %c0_70, %c0_71] : memref<1x16x128xf32, #tpu.memory_space<vmem>>, vector<1x16x128xf32>
    %144 = vector.shape_cast %143 : vector<1x16x128xf32> to vector<16x128xf32>
    %145 = vector.shape_cast %142 : vector<16x128xf32> to vector<1x16x128xf32>
    tpu.vector_store %arg16[%c0_69, %c0_70, %c0_71], %145 {strides = array<i32>} : memref<1x16x128xf32, #tpu.memory_space<vmem>>, vector<1x16x128xf32>,
    return
  }
  func.func @transform_0(%arg0: i32) -> (i32, i32, i32) {
    %c0_i32 = arith.constant 0 : i32
    %c0_i32_0 = arith.constant 0 : i32
    %c0_i32_1 = arith.constant 0 : i32
    return %arg0, %c0_i32, %c0_i32_0 : i32, i32, i32
  }
  func.func @transform_1(%arg0: i32) -> (i32, i32, i32) {
    %c0_i32 = arith.constant 0 : i32
    %c0_i32_0 = arith.constant 0 : i32
    %c0_i32_1 = arith.constant 0 : i32
    return %arg0, %c0_i32, %c0_i32_0 : i32, i32, i32
  }
  func.func @transform_2(%arg0: i32) -> (i32, i32) {
    %c0_i32 = arith.constant 0 : i32
    %c0_i32_0 = arith.constant 0 : i32
    %c0_i32_1 = arith.constant 0 : i32
    return %c0_i32, %c0_i32_0 : i32, i32
  }
  func.func @transform_3(%arg0: i32) -> (i32, i32) {
    %c0_i32 = arith.constant 0 : i32
    %c0_i32_0 = arith.constant 0 : i32
    %c0_i32_1 = arith.constant 0 : i32
    return %c0_i32, %c0_i32_0 : i32, i32
  }
  func.func @transform_4(%arg0: i32) -> (i32, i32) {
    %c0_i32 = arith.constant 0 : i32
    %c0_i32_0 = arith.constant 0 : i32
    %c0_i32_1 = arith.constant 0 : i32
    return %c0_i32, %c0_i32_0 : i32, i32
  }
  func.func @transform_5(%arg0: i32) -> (i32, i32, i32) {
    %c0_i32 = arith.constant 0 : i32
    %c0_i32_0 = arith.constant 0 : i32
    %c0_i32_1 = arith.constant 0 : i32
    %c0_i32_2 = arith.constant 0 : i32
    return %c0_i32, %c0_i32_0, %c0_i32_1 : i32, i32, i32
  }
  func.func @transform_6(%arg0: i32) -> (i32, i32) {
    %c0_i32 = arith.constant 0 : i32
    %c0_i32_0 = arith.constant 0 : i32
    %c0_i32_1 = arith.constant 0 : i32
    return %c0_i32, %c0_i32_0 : i32, i32
  }
  func.func @transform_7(%arg0: i32) -> (i32, i32) {
    %c0_i32 = arith.constant 0 : i32
    %c0_i32_0 = arith.constant 0 : i32
    %c0_i32_1 = arith.constant 0 : i32
    return %c0_i32, %c0_i32_0 : i32, i32
  }
  func.func @transform_8(%arg0: i32) -> (i32, i32) {
    %c0_i32 = arith.constant 0 : i32
    %c0_i32_0 = arith.constant 0 : i32
    %c0_i32_1 = arith.constant 0 : i32
    return %c0_i32, %c0_i32_0 : i32, i32
  }
  func.func @transform_9(%arg0: i32) -> (i32, i32) {
    %c0_i32 = arith.constant 0 : i32
    %c0_i32_0 = arith.constant 0 : i32
    %c0_i32_1 = arith.constant 0 : i32
    return %c0_i32, %c0_i32_0 : i32, i32
  }
  func.func @transform_10(%arg0: i32) -> (i32, i32) {
    %c0_i32 = arith.constant 0 : i32
    %c0_i32_0 = arith.constant 0 : i32
    %c0_i32_1 = arith.constant 0 : i32
    return %c0_i32, %c0_i32_0 : i32, i32
  }
  func.func @transform_11(%arg0: i32) -> (i32, i32, i32) {
    %c0_i32 = arith.constant 0 : i32
    %c0_i32_0 = arith.constant 0 : i32
    %c0_i32_1 = arith.constant 0 : i32
    %c0_i32_2 = arith.constant 0 : i32
    return %c0_i32, %c0_i32_0, %c0_i32_1 : i32, i32, i32
  }
  func.func @transform_12(%arg0: i32) -> (i32, i32) {
    %c0_i32 = arith.constant 0 : i32
    %c0_i32_0 = arith.constant 0 : i32
    %c0_i32_1 = arith.constant 0 : i32
    return %c0_i32, %c0_i32_0 : i32, i32
  }
  func.func @transform_13(%arg0: i32) -> (i32, i32) {
    %c0_i32 = arith.constant 0 : i32
    %c0_i32_0 = arith.constant 0 : i32
    %c0_i32_1 = arith.constant 0 : i32
    return %c0_i32, %c0_i32_0 : i32, i32
  }
  func.func @transform_14(%arg0: i32) -> (i32, i32) {
    %c0_i32 = arith.constant 0 : i32
    %c0_i32_0 = arith.constant 0 : i32
    %c0_i32_1 = arith.constant 0 : i32
    return %c0_i32, %c0_i32_0 : i32, i32
  }
  func.func @transform_15(%arg0: i32) -> (i32, i32, i32) {
    %c0_i32 = arith.constant 0 : i32
    %c0_i32_0 = arith.constant 0 : i32
    %c0_i32_1 = arith.constant 0 : i32
    return %arg0, %c0_i32, %c0_i32_0 : i32, i32, i32
  }
}

</mosaic_0001>

<bundles_post_ra>
// kernel: tpu_custom_call.1
= control target key start
LH: loop header
LB: loop body
LE: loop exit
PB: predicated region body
PF: predicated region fallthrough
CT: control target
= control target key end

     0   :  { %s3531_s0 = inlined_call_operand.hbm [shape: f32[2,16,64], index: 0, kind: input, shape index: {}]   ;;  %s3532_s1 = inlined_call_operand.vmem [shape: f32[2,1,32], index: 1, kind: input, shape index: {}]   ;;  %s3533_s2 = inlined_call_operand.vmem [shape: f32[1,64], index: 2, kind: input, shape index: {}]   ;;  %s3534_s3 = inlined_call_operand.vmem [shape: f32[1,64], index: 3, kind: input, shape index: {}]   ;;  %s3535_s4 = inlined_call_operand.hbm [shape: f32[64,64], index: 4, kind: input, shape index: {}]   ;;  %s3536_s5 = inlined_call_operand.hbm [shape: f32[3,64,128], index: 5, kind: input, shape index: {}]   ;;  %s3537_s6 = inlined_call_operand.vmem [shape: f32[1,128], index: 6, kind: input, shape index: {}]   ;;  %s3538_s7 = inlined_call_operand.vmem [shape: f32[1,128], index: 7, kind: input, shape index: {}]   ;;  %s3539_s8 = inlined_call_operand.hbm [shape: f32[128,128], index: 8, kind: input, shape index: {}]   ;;  %s3540_s9 = inlined_call_operand.hbm [shape: f32[32,256], index: 9, kind: input, shape index: {}]   ;;  %s3541_s10 = inlined_call_operand.vmem [shape: f32[1,256], index: 10, kind: input, shape index: {}]   ;;  %s3542_s11 = inlined_call_operand.hbm [shape: f32[3,128,128], index: 11, kind: input, shape index: {}]   ;;  %s3543_s12 = inlined_call_operand.hbm [shape: f32[64,128], index: 12, kind: input, shape index: {}]   ;;  %s3544_s13 = inlined_call_operand.vmem [shape: f32[1,128], index: 13, kind: input, shape index: {}]   ;;  %s3545_s14 = inlined_call_operand.vmem [shape: f32[1,128], index: 14, kind: input, shape index: {}]   ;;  %s3546_s15 = inlined_call_operand.hbm [shape: f32[2,16,128], index: 15, kind: output, shape index: {}]  }
   0x1   :  { %3554 = sst [smem:[#allocation20_spill]] %s3532_s1 }
   0x2   :  { %3555 = sst [smem:[#allocation21_spill]] %s3535_s4 }
   0x3   :  { %3556 = sst [smem:[#allocation22_spill]] %s3537_s6 }
   0x4   :  { %3557 = sst [smem:[#allocation23_spill]] %s3538_s7 }
   0x5   :  { %3558 = sst [smem:[#allocation24_spill]] %s3541_s10 }
   0x6   :  { %3559 = sst [smem:[#allocation25_spill]] %s3544_s13 }
   0x7   :  { %3560 = sst [smem:[#allocation26_spill]] %s3545_s14 }
   0x8   :  { %3561 = sst [smem:[#allocation27_spill]] %s3546_s15 }
   0x9   :  { %20 = vsyncpa [#allocation3], 0 }
   0xa   :  { %22 = vsyncpa [#allocation3 + $0x1], 0 }
   0xb   :  { %23 = vsyncpa [#allocation6], 0 }
   0xc   :  { %24 = vsyncpa [#allocation9], 0 }
   0xd   :  { %25 = vsyncpa [#allocation12], 0 }
   0xe   :  { %26 = vsyncpa [#allocation4], 0 }
   0xf   :  { %28 = vsyncpa [#allocation4 + $0x1], 0  ;;  %s3042_s18 = smov 0   ;;  %s3044_s19 = smov 0  }
  0x10   :  { %s3046_s20 = smov 0   ;;  %s3048_s21 = smov 0  }
  0x11 LB: > { %s2945_s22 = smov [#allocation5]   ;;  %s3063_s24 = sadd.s32 4294967295, %s2943_s21   ;;  %s2943_s21 = sphi %s3048_s21, %s3594_s21   ;;  %s2939_s20 = sphi %s3046_s20, %s3593_s20   ;;  %s2935_s19 = sphi %s3044_s19, %s3592_s19   ;;  %s2931_s18 = sphi %s3042_s18, %s3591_s18  }
  0x12   : > { %s408_s23 = sshll.u32 %s2945_s22, 4  ;;  %p1909_p0 = scmp.ge.s32.totalorder %s2943_s21, 1  ;;  %s3068_s23 = int_to_ptr.vmem [resolvable:$true] %s408_s23 }
  0x13   : > { %p3548_p1 = scmp.eq.s32.totalorder %s3063_s24, 0  ;;  %p390_p2 = scmp.lt.s32.totalorder %s2943_s21, 3 }
  0x14   : > { %s2946_s26 = smov [#allocation8]   ;;  %s2947_s29 = smov [#allocation11]  }
  0x15   : > { %p3070_p3 = pnand %p1909_p0, %p390_p2  ;;  %s440_s27 = sshll.u32 %s2946_s26, 4  ;;  %s3083_s27 = int_to_ptr.vmem [resolvable:$true] %s440_s27 }
  0x16   : > { %s469_s30 = sshll.u32 %s2947_s29, 4  ;;  %s3564_s4 = sld [smem:[#allocation21_spill]]  ;;  %s3085_s30 = int_to_ptr.vmem [resolvable:$true] %s469_s30 }
  0x17   : > { %s3562_s25 = scalar_select %p3070_p3, 1, 0 }
  0x18   : > { %p2555_p5 = pneg %p3070_p3 }
  0x1a   : > { %p3079_p6 = pnand %p2555_p5, %p3548_p1 }
  0x1c   : > { %s2667_s22 = scalar_lea.hbm %s3564_s4, 1024  ;;  %p3095_p8 = pneg %p3079_p6 }
  0x1d   : > { %p2668_p7 = scmp.ne.s32.totalorder %s3564_s4, %s2667_s22  ;;  %p2674_p11 = scmp.lt.u32.totalorder %s2667_s22, %s3564_s4 }
  0x1f   : > { %p2670_p9 = pnand %p3095_p8, %p2668_p7 }
  0x21   : > { %p2671_p10 = pneg %p2670_p9 }
  0x23   : > { %p2676_p12 = pnand %p2674_p11, %p2671_p10 }
  0x25   : > { %2679 = shalt.err (!%p2676_p12)
}
  0x26   : > { %s2680_s14 = scalar_lea.vmem %s3068_s23, 1024  ;;  %p2688_p5 = scmp.lt.s32.totalorder %s3068_s23, %s3068_s23 }
  0x27   : > { %p2681_p13 = scmp.ne.s32.totalorder %s3068_s23, %s2680_s14  ;;  %p2689_p4 = scmp.lt.s32.totalorder %s2680_s14, %s2680_s14 }
  0x29   : > { %p2683_p0 = pnand %p2681_p13, %p3095_p8  ;;  %p2690_p7 = por %p2689_p4, %p2688_p5 }
  0x2b   : > { %p2684_p2 = pneg %p2683_p0 }
  0x2d   : > { %p2691_p9 = pnand %p2690_p7, %p2684_p2 }
  0x2f   : > { %2694 = shalt.err (!%p2691_p9)
}
  0x30   : > { %s3550_s15 = smov 128   ;;  %s3552_s13 = smov 8  }
  0x31   : > { %2558 = dma.hbm_to_vmem [thread:$0]  (!%p3079_p6), %s3564_s4, 1024, %s3068_s23, [#allocation6], %s3550_s15, %s3550_s15, %s3552_s13  }
  0x32   : > { %s2695_s14 = scalar_lea.hbm %s3539_s8, 2048 }
  0x33   : > { %p2696_p4 = scmp.ne.s32.totalorder %s3539_s8, %s2695_s14  ;;  %p2702_p12 = scmp.lt.u32.totalorder %s2695_s14, %s3539_s8 }
  0x35   : > { %p2698_p10 = pnand %p2696_p4, %p3095_p8 }
  0x37   : > { %p2699_p11 = pneg %p2698_p10 }
  0x39   : > { %p2704_p13 = pnand %p2702_p12, %p2699_p11 }
  0x3b   : > { %2707 = shalt.err (!%p2704_p13)
}
  0x3c   : > { %s2708_s23 = scalar_lea.vmem %s3083_s27, 2048  ;;  %p2716_p7 = scmp.lt.s32.totalorder %s3083_s27, %s3083_s27 }
  0x3d   : > { %p2709_p0 = scmp.ne.s32.totalorder %s3083_s27, %s2708_s23  ;;  %p2717_p9 = scmp.lt.s32.totalorder %s2708_s23, %s2708_s23 }
  0x3f   : > { %p2711_p2 = pnand %p2709_p0, %p3095_p8  ;;  %p2718_p4 = por %p2717_p9, %p2716_p7 }
  0x41   : > { %p2712_p5 = pneg %p2711_p2 }
  0x43   : > { %p2719_p10 = pnand %p2718_p4, %p2712_p5 }
  0x45   : > { %2722 = shalt.err (!%p2719_p10)
}
  0x46   : > { %2564 = dma.hbm_to_vmem [thread:$0]  (!%p3079_p6), %s3539_s8, 2048, %s3083_s27, [#allocation9], %s3550_s15, %s3550_s15, %s3552_s13  }
  0x47   : > { %s2723_s16 = scalar_lea.hbm %s3542_s11, 6144 }
  0x48   : > { %p2724_p11 = scmp.ne.s32.totalorder %s3542_s11, %s2723_s16  ;;  %p2730_p0 = scmp.lt.u32.totalorder %s2723_s16, %s3542_s11 }
  0x4a   : > { %p2726_p12 = pnand %p2724_p11, %p3095_p8 }
  0x4c   : > { %p2727_p13 = pneg %p2726_p12 }
  0x4e   : > { %p2732_p2 = pnand %p2730_p0, %p2727_p13 }
  0x50   : > { %2735 = shalt.err (!%p2732_p2)
}
  0x51   : > { %s2736_s27 = scalar_lea.vmem %s3085_s30, 6144  ;;  %p2744_p4 = scmp.lt.s32.totalorder %s3085_s30, %s3085_s30 }
  0x52   : > { %p2737_p5 = scmp.ne.s32.totalorder %s3085_s30, %s2736_s27  ;;  %p2745_p10 = scmp.lt.s32.totalorder %s2736_s27, %s2736_s27 }
  0x54   : > { %p2739_p7 = pnand %p2737_p5, %p3095_p8  ;;  %p2746_p11 = por %p2745_p10, %p2744_p4 }
  0x56   : > { %p2740_p9 = pneg %p2739_p7 }
  0x58   : > { %p2747_p12 = pnand %p2746_p11, %p2740_p9 }
  0x5a   : > { %2750 = shalt.err (!%p2747_p12)
}
  0x5b   : > { %2570 = dma.hbm_to_vmem [thread:$0]  (!%p3079_p6), %s3542_s11, 6144, %s3085_s30, [#allocation12], %s3550_s15, %s3550_s15, %s3552_s13  }
  0x5c   : > { %s2950_s6 = smov [#allocation7]   ;;  %s2951_s10 = smov [#allocation10]  }
  0x5d   : > { %s421_s7 = sshll.u32 %s2950_s6, 4  ;;  %s453_s16 = sshll.u32 %s2951_s10, 4  ;;  %s422_s7 = int_to_ptr.vmem [resolvable:$true] %s421_s7  ;;  %s454_s16 = int_to_ptr.vmem [resolvable:$true] %s453_s16 }
  0x5e   : > { %s2751_s29 = scalar_lea.hbm %s3536_s5, 3072 }
  0x5f   : > { %p2752_p13 = scmp.ne.s32.totalorder %s3536_s5, %s2751_s29  ;;  %p2758_p5 = scmp.lt.u32.totalorder %s2751_s29, %s3536_s5 }
  0x61   : > { %p2754_p0 = pnand %p2752_p13, %p3095_p8 }
  0x63   : > { %p2755_p2 = pneg %p2754_p0 }
  0x65   : > { %p2760_p7 = pnand %p2758_p5, %p2755_p2 }
  0x67   : > { %2763 = shalt.err (!%p2760_p7)
}
  0x68   : > { %s2764_s30 = scalar_lea.vmem %s422_s7, 3072  ;;  %p2772_p11 = scmp.lt.s32.totalorder %s422_s7, %s422_s7 }
  0x69   : > { %p2765_p9 = scmp.ne.s32.totalorder %s422_s7, %s2764_s30  ;;  %p2773_p12 = scmp.lt.s32.totalorder %s2764_s30, %s2764_s30 }
  0x6b   : > { %p2767_p4 = pnand %p2765_p9, %p3095_p8  ;;  %p2774_p1 = por %p2773_p12, %p2772_p11 }
  0x6d   : > { %p2768_p10 = pneg %p2767_p4 }
  0x6f   : > { %p2775_p3 = pnand %p2774_p1, %p2768_p10 }
  0x71   : > { %2778 = shalt.err (!%p2775_p3)
}
  0x72   : > { %2561 = dma.hbm_to_vmem [thread:$0]  (!%p3079_p6), %s3536_s5, 3072, %s422_s7, [#allocation6], %s3550_s15, %s3550_s15, %s3552_s13  }
  0x73   : > { %s2779_s17 = scalar_lea.hbm %s3540_s9, 1024 }
  0x74   : > { %p2780_p1 = scmp.ne.s32.totalorder %s3540_s9, %s2779_s17  ;;  %p2786_p0 = scmp.lt.u32.totalorder %s2779_s17, %s3540_s9 }
  0x76   : > { %p2782_p3 = pnand %p2780_p1, %p3095_p8 }
  0x78   : > { %p2783_p13 = pneg %p2782_p3 }
  0x7a   : > { %p2788_p2 = pnand %p2786_p0, %p2783_p13 }
  0x7c   : > { %2791 = shalt.err (!%p2788_p2)
}
  0x7d   : > { %s2792_s23 = scalar_lea.vmem %s454_s16, 1024  ;;  %p2800_p4 = scmp.lt.s32.totalorder %s454_s16, %s454_s16 }
  0x7e   : > { %p2793_p5 = scmp.ne.s32.totalorder %s454_s16, %s2792_s23  ;;  %p2801_p10 = scmp.lt.s32.totalorder %s2792_s23, %s2792_s23 }
  0x80   : > { %p2795_p7 = pnand %p2793_p5, %p3095_p8  ;;  %p2802_p11 = por %p2801_p10, %p2800_p4 }
  0x82   : > { %p2796_p9 = pneg %p2795_p7 }
  0x84   : > { %p2803_p12 = pnand %p2802_p11, %p2796_p9 }
  0x86   : > { %2806 = shalt.err (!%p2803_p12)
}
  0x87   : > { %s2952_s7 = smov 256   ;;  %s2953_s30 = smov 16  }
  0x88   : > { %2567 = dma.hbm_to_vmem [thread:$0]  (!%p3079_p6), %s3540_s9, 1024, %s454_s16, [#allocation9], %s2952_s7, %s2952_s7, %s2953_s30  }
  0x89   : > { %s2954_s6 = smov [#allocation13]   ;;  %s2807_s29 = scalar_lea.hbm %s3543_s12, 1024 }
  0x8a   : > { %s482_s10 = sshll.u32 %s2954_s6, 4  ;;  %p2808_p1 = scmp.ne.s32.totalorder %s3543_s12, %s2807_s29  ;;  %s483_s10 = int_to_ptr.vmem [resolvable:$true] %s482_s10 }
  0x8b   : > { %p2814_p0 = scmp.lt.u32.totalorder %s2807_s29, %s3543_s12 }
  0x8c   : > { %p2810_p3 = pnand %p2808_p1, %p3095_p8 }
  0x8e   : > { %p2811_p13 = pneg %p2810_p3 }
  0x90   : > { %p2816_p2 = pnand %p2814_p0, %p2811_p13 }
  0x92   : > { %2819 = shalt.err (!%p2816_p2)
}
  0x93   : > { %s2820_s16 = scalar_lea.vmem %s483_s10, 1024  ;;  %p2828_p4 = scmp.lt.s32.totalorder %s483_s10, %s483_s10 }
  0x94   : > { %p2821_p5 = scmp.ne.s32.totalorder %s483_s10, %s2820_s16  ;;  %p2829_p10 = scmp.lt.s32.totalorder %s2820_s16, %s2820_s16 }
  0x96   : > { %p2823_p7 = pnand %p2821_p5, %p3095_p8  ;;  %p2830_p11 = por %p2829_p10, %p2828_p4 }
  0x98   : > { %p2824_p9 = pneg %p2823_p7 }
  0x9a   : > { %p2831_p12 = pnand %p2830_p11, %p2824_p9 }
  0x9c   : > { %2834 = shalt.err (!%p2831_p12)
}
  0x9d   : > { %s3566_s7 = smov 128   ;;  %s1908_s28 = sadd.s32 4294967294, %s2943_s21  }
  0x9e   : > { %2573 = dma.hbm_to_vmem [thread:$0]  (!%p3079_p6), %s3543_s12, 1024, %s483_s10, [#allocation12], %s3566_s7, %s3566_s7, %s3552_s13  }
  0x9f   : > { %s3233_s26 = sadd.s32 1, %s2943_s21   ;;  %s41_s1 = sadd.s32 1, %s2939_s20 }
  0xa0   : > { %s38_s4 = ssub.s32 %s2943_s21, %s3233_s26  ;;  %p48_p1 = scmp.ne.s32.totalorder %s2939_s20, %s2935_s19 }
  0xa1   : > { %p39_p8 = scmp.eq.s32.totalorder %s38_s4, 0  ;;  %p49_p3 = scmp.eq.s32.totalorder %s2943_s21, 0 }
  0xa2   : > { %p54_p13 = scmp.ne.s32.totalorder %s2935_s19, %s2931_s18  ;;  %p3568_p2 = scmp.eq.s32.totalorder %s3063_s24, 0 }
  0xa3   : > { %s3244_s6 = scalar_select %p39_p8, %s2939_s20, %s41_s1  }
  0xa4   : > { %p3246_p0 = por %p49_p3, %p48_p1  ;;  %p3252_p6 = por %p3568_p2, %p54_p13 }
  0xa5   : > { %p377_p5 = scmp.eq.s32.totalorder %s3063_s24, 1  ;;  %p383_p7 = scmp.eq.s32.totalorder %s1908_s28, 1 }
  0xa6   : > { %p2588_p9 = scmp.lt.s32.totalorder %s2943_s21, 2  ;;  %s502_s22 = sand.u32 1, %s2939_s20  }
  0xa7   : > { %p3259_p4 = por %p377_p5, %p48_p1  ;;  %p3263_p10 = por %p383_p7, %p54_p13 }
  0xa8   : > { %s1917_s27 = sshll.u32 %s502_s22, 4  ;;  %s1958_s23 = sshll.u32 %s2943_s21, 8 }
  0xa9   : > { %s3570_s29 = scalar_select %p3259_p4, 1, 0 }
  0xaa   : > { %s3571_s14 = scalar_select %p3263_p10, 1, 0 }
  0xab   : > { %s3271_s30 = scalar_lea.hbm %s3531_s0, %s1958_s23  ;;  %s506_s28 = scalar_lea.vmem [#allocation2], %s1917_s27 }
  0xac   : > { %s513_s4 = sshll.u32 %s506_s28, 4  ;;  %p3277_p11 = pnand %p2588_p9, %p3246_p0  ;;  %s3273_s4 = int_to_ptr.vmem [resolvable:$true] %s513_s4 }
  0xad   : > { %s3281_s13 = scalar_lea.sflag [#allocation3], %s502_s22  ;;  %s2835_s16 = scalar_lea.hbm %s3271_s30, 256 }
  0xae   : > { %p2836_p12 = scmp.ne.s32.totalorder %s3271_s30, %s2835_s16  ;;  %p2837_p8 = pneg %p3277_p11 }
  0xaf   : > { %s2840_s17 = scalar_lea.hbm %s3531_s0, 512  ;;  %p2841_p13 = scmp.lt.u32.totalorder %s3271_s30, %s3531_s0 }
  0xb0   : > { %p2838_p1 = pnand %p2837_p8, %p2836_p12  ;;  %p2842_p0 = scmp.lt.u32.totalorder %s2840_s17, %s2835_s16 }
  0xb1   : > { %p2844_p5 = scmp.lt.u32.totalorder %s2835_s16, %s3271_s30 }
  0xb2   : > { %p2839_p3 = pneg %p2838_p1  ;;  %p2843_p2 = por %p2842_p0, %p2841_p13 }
  0xb4   : > { %p2845_p7 = por %p2844_p5, %p2843_p2 }
  0xb6   : > { %p2846_p9 = pnand %p2845_p7, %p2839_p3 }
  0xb8   : > { %2849 = shalt.err (!%p2846_p9)
}
  0xb9   : > { %s2850_s22 = scalar_lea.vmem %s3273_s4, 256  ;;  %s2955_s27 = smov [#allocation2]  }
  0xba   : > { %p2851_p12 = scmp.ne.s32.totalorder %s3273_s4, %s2850_s22  ;;  %s2855_s23 = sshll.u32 %s2955_s27, 4  ;;  %s2856_s23 = int_to_ptr.vmem [resolvable:$false] %s2855_s23 }
  0xbb   : > { %s2857_s15 = scalar_lea.vmem %s2856_s23, 512  ;;  %p2858_p4 = scmp.lt.s32.totalorder %s3273_s4, %s2856_s23 }
  0xbc   : > { %p2853_p1 = pnand %p2851_p12, %p2837_p8  ;;  %p2859_p13 = scmp.lt.s32.totalorder %s2857_s15, %s2850_s22 }
  0xbe   : > { %p2854_p10 = pneg %p2853_p1  ;;  %p2860_p0 = por %p2859_p13, %p2858_p4 }
  0xc0   : > { %p2861_p2 = pnand %p2860_p0, %p2854_p10 }
  0xc2   : > { %2864 = shalt.err (!%p2861_p2)
}
  0xc3   : > { %s3573_s16 = smov 8   ;;  %p3574_p8 = scmp.ne.s32.totalorder %s3562_s25, 0 }
  0xc4   : > { %2577 = dma.hbm_to_vmem [thread:$0]  (!%p3277_p11), %s3271_s30, 256, %s3273_s4, %s3281_s13, %s3566_s7, %s3566_s7, %s3573_s16  }
  0xc5   : > { %531 = sbr.rel (%p3574_p8) target bundleno = 1296 (0x510), region = 80  ;;  %s3315_s17 = sand.u32 (!%p3574_p8), 1, %s2935_s19  }
  0xc6   : > { %s1921_s28 = sshll.u32 (!%p3574_p8), %s3315_s17, 4  ;;  %s534_s22 = scalar_lea.sflag (!%p3574_p8), [#allocation3], %s3315_s17 }
  0xc7   : > { %s537_s1 = scalar_lea.vmem (!%p3574_p8), [#allocation2], %s1921_s28 }
  0xcc   : > { %2910 = dma.done.wait (%p3252_p6), %s534_s22, 256  }
  0xcd   : > { %2912 = vsyncadd (%p3252_p6), %s534_s22, 4294967040  ;;  %p3575_p4 = scmp.eq.s32.totalorder %s3063_s24, 0 }
  0xcf   : > { %2914 = dma.done.wait (%p3575_p4), [#allocation6], 4096   ;;  %p3576_p10 = pmov %p3575_p4 }
  0xd0   : > { %p3577_p11 = pmov %p3575_p4 }
  0xd1   : > { %2916 = vsyncadd (%p3576_p10), [#allocation6], 4294963200 }
  0xd2   : > { %2918 = dma.done.wait (%p3577_p11), [#allocation9], 3072   ;;  %p3578_p3 = pmov %p3575_p4 }
  0xd4   : > { %2920 = vsyncadd (%p3578_p3), [#allocation9], 4294964224  ;;  %p3579_p5 = pmov %p3578_p3 }
  0xd5   : > { %p3580_p7 = pmov %p3578_p3 }
  0xd6   : > { %2922 = dma.done.wait (%p3579_p5), [#allocation12], 7168  }
  0xd7   : > { %2924 = vsyncadd (%p3580_p7), [#allocation12], 4294960128  ;;  %v2956_v0 = vmov 0.0|0.0   ;;  %vm2957_vm0 = vmmov 0   ;;  %v2958_v1 = vmov 0.0   ;;  %v639_v2 = vld [vmem:[#allocation5] sm:$0xff] }
  0xd8   : > { %2315 = vmatprep.subr.bf16.mxu0 %v2956_v0  ;;  %2096 = vmatprep.mubr.msk.f32.mxu0 %vm2957_vm0, %v2958_v1  ;;  %v640_v3 = vld [vmem:[#allocation5 + $0x8] sm:$0xff]  ;;  %v641_v4 = vld [vmem:[#allocation5 + $0x10] sm:$0xff]  ;;  %vm616_vm1 = vcmask 523264   ;;  %v642_v6 = vld [vmem:[#allocation5 + $0x18] sm:$0xff]  ;;  %vm637_vm2 = vcmask 1040384   ;;  %vm954_vm3 = vcmask 1046528  }
  0xd9   : > { %v2316_v5 = vpack.c.bf16 %v640_v3, %v639_v2  ;;  %v3340_v7 = vld [vmem:[%s537_s1] sm:$0xff]  ;;  %v2319_v8 = vpack.c.bf16 %v642_v6, %v641_v4  ;;  %v3342_v9 = vld [vmem:[%s537_s1 + $0x8] sm:$0xff]  ;;  %p611_p6 = scmp.lt.s32.totalorder %s3063_s24, 1  ;;  %s3581_s23 = sld [smem:[#allocation20_spill]]  ;;  %vm1372_vm4 = vcmask 261120   ;;  %vm1173_vm5 = vcmask 1041408   ;;  %vm1950_vm7 = vmneg %vm637_vm2 }
  0xda   : > { %v617_v10 = vsel %vm616_vm1, %v3340_v7, 0.0  ;;  %v626_v11 = vmul.f32 %v3340_v7, %v3340_v7  ;;  %v643_v12 = vld [vmem:[#allocation5 + $0x20] sm:$0xff]  ;;  %v644_v13 = vld [vmem:[#allocation5 + $0x28] sm:$0xff]  ;;  %v618_v14 = vsel %vm616_vm1, %v3342_v9, 0.0  ;;  %v627_v15 = vmul.f32 %v3342_v9, %v3342_v9  ;;  %v645_v22 = vld [vmem:[#allocation5 + $0x30] sm:$0xff]  ;;  %s3582_s1 = sld [smem:[#allocation22_spill]] }
  0xdb   : > { %2317 = vmatpush3.bf16.msra.mxu0 %v2316_v5  ;;  %v619_v16 = vadd.f32 %v618_v14, %v617_v10  ;;  %v2322_v19 = vpack.c.bf16 %v644_v13, %v643_v12  ;;  %v646_v23 = vld [vmem:[#allocation5 + $0x38] sm:$0xff]  ;;  %v787_v37 = vld [vmem:[#allocation7 + $0x40] sm:$0xff]  ;;  %v788_v38 = vld [vmem:[#allocation7 + $0x48] sm:$0xff]  ;;  %s612_s30 = scalar_select %p611_p6, %s3063_s24, 1  ;;  %vm1175_vm6 = vcmask 1042432  }
  0xdc   : > { %2318 = vmatprep.subr.bf16.mxu0 %v2956_v0  ;;  %v628_v17 = vsel %vm616_vm1, %v626_v11, 0.0  ;;  %v629_v18 = vsel %vm616_vm1, %v627_v15, 0.0  ;;  %v2325_v26 = vpack.c.bf16 %v646_v23, %v645_v22  ;;  %v778_v39 = vld [vmem:[#allocation7] sm:$0xff]  ;;  %v2327_v40 = vpack.c.bf16 %v788_v38, %v787_v37  ;;  %v779_v41 = vld [vmem:[#allocation7 + $0x8] sm:$0xff]  ;;  %v789_v42 = vld [vmem:[#allocation7 + $0x50] sm:$0xff]  ;;  %s3583_s7 = sld [smem:[#allocation23_spill]] }
  0xdd   : > { %v620_v20 = vrot.slane %v619_v16, 4  ;;  %v630_v21 = vadd.f32 %v629_v18, %v628_v17  ;;  %v790_v43 = vld [vmem:[#allocation7 + $0x58] sm:$0xff]  ;;  %v2343_v44 = vpack.c.bf16 %v779_v41, %v778_v39  ;;  %v780_v46 = vld [vmem:[#allocation7 + $0x10] sm:$0xff]  ;;  %v791_v48 = vld [vmem:[#allocation7 + $0x60] sm:$0xff]  ;;  %v725_v11 = vlaneseq  ;;  %s3584_s4 = sld [smem:[#allocation24_spill]]  ;;  %s610_s25 = scalar_lea.vmem [#allocation14], %s1921_s28 }
  0xde   : > { %v2331_v45 = vpack.c.bf16 %v790_v43, %v789_v42  ;;  %v781_v47 = vld [vmem:[#allocation7 + $0x18] sm:$0xff]  ;;  %v792_v50 = vld [vmem:[#allocation7 + $0x68] sm:$0xff]  ;;  %v782_v51 = vld [vmem:[#allocation7 + $0x20] sm:$0xff]  ;;  %s1769_s13 = sshll.u32 %s610_s25, 4  ;;  %p3588_p12 = scmp.ne.s32.totalorder %s3570_s29, 0  ;;  %s3482_s13 = int_to_ptr.vmem [resolvable:$true] %s1769_s13 }
  0xdf   : > { %2320 = vmatpush3.bf16.msra.mxu0 %v2319_v8  ;;  %v621_v24 = vadd.f32 %v620_v20, %v619_v16  ;;  %v631_v25 = vrot.slane %v630_v21, 4  ;;  %v2347_v49 = vpack.c.bf16 %v781_v47, %v780_v46  ;;  %v783_v52 = vld [vmem:[#allocation7 + $0x28] sm:$0xff]  ;;  %2344 = vmatprep.subr.bf16.mxu1 %v2343_v44  ;;  %v2335_v53 = vpack.c.bf16 %v792_v50, %v791_v48  ;;  %v793_v55 = vld [vmem:[#allocation7 + $0x70] sm:$0xff]  ;;  %v794_v56 = vld [vmem:[#allocation7 + $0x78] sm:$0xff]  ;;  %s613_s15 = scalar_lea.vmem %s3581_s23, %s612_s30  ;;  %s2865_s28 = scalar_lea.vmem %s3482_s13, 256 }
  0xe0   : > { %2321 = vmatprep.subr.bf16.mxu0 %v2956_v0  ;;  %2346 = vmatpush3.bf16.msra.mxu1 %v2343_v44  ;;  %v2351_v54 = vpack.c.bf16 %v783_v52, %v782_v51  ;;  %v784_v57 = vld [vmem:[#allocation7 + $0x30] sm:$0xff]  ;;  %v785_v58 = vld [vmem:[#allocation7 + $0x38] sm:$0xff]  ;;  %v2339_v59 = vpack.c.bf16 %v794_v56, %v793_v55  ;;  %v1051_v61 = vld [vmem:[#allocation13] sm:$0xff]  ;;  %v3362_v14 = vshrl.u32 %v725_v11, 7  ;;  %p2866_p9 = scmp.ne.s32.totalorder %s3482_s13, %s2865_s28  ;;  %s2959_s23 = smov [#allocation14]  }
  0xe1   : > { %v622_v27 = vrot.slane %v621_v24, 2  ;;  %v632_v28 = vadd.f32 %v631_v25, %v630_v21  ;;  %2348 = vmatprep.subr.bf16.mxu1 %v2347_v49  ;;  %v2355_v60 = vpack.c.bf16 %v785_v58, %v784_v57  ;;  %v1052_v62 = vld [vmem:[#allocation13 + $0x8] sm:$0xff]  ;;  %v961_v2 = vld [vmem:[#allocation7 + $0x80] sm:$0xff]  ;;  %v1054_v37 = vld [vmem:[#allocation13 + $0x18] sm:$0xff] }
  0xe2   : > { %v2375_v63 = vpack.c.bf16 %v1052_v62, %v1051_v61  ;;  %v962_v3 = vld [vmem:[#allocation7 + $0x88] sm:$0xff]  ;;  %v3365_v15 = vsub.s32 0, %v3362_v14  ;;  %v3369_v17 = vsub.s32 1, %v3362_v14  ;;  %v1930_v22 = vld [vmem:[%s3533_s2] ss:$0 sm:$0xff]  ;;  %v963_v43 = vld [vmem:[#allocation7 + $0x90] sm:$0xff]  ;;  %p2867_p1 = pnand %p2866_p9, %p3588_p12 }
  0xe3   : > { %2323 = vmatpush3.bf16.msra.mxu0 %v2322_v19  ;;  %v623_v29 = vadd.f32 %v622_v27, %v621_v24  ;;  %v633_v30 = vrot.slane %v632_v28, 2  ;;  %v3359_v4 = vpack.c.bf16 %v962_v3, %v961_v2  ;;  %v1931_v25 = vld [vmem:[%s3534_s3] ss:$0 sm:$0xff]  ;;  %v964_v44 = vld [vmem:[#allocation7 + $0x98] sm:$0xff]  ;;  %v1056_v48 = vld [vmem:[#allocation13 + $0x28] sm:$0xff] }
  0xe4   : > { %2324 = vmatprep.subr.bf16.mxu0 %v2956_v0  ;;  %2350 = vmatpush3.bf16.msra.mxu1 %v2347_v49  ;;  %v1055_v47 = vld [vmem:[#allocation13 + $0x20] sm:$0xff]  ;;  %v2363_v52 = vpack.c.bf16 %v964_v44, %v963_v43  ;;  %v966_v56 = vld [vmem:[#allocation7 + $0xa8] sm:$0xff]  ;;  %v1057_v58 = vld [vmem:[#allocation13 + $0x30] sm:$0xff]  ;;  %p2868_p13 = pneg %p2867_p1 }
  0xe5   : > { %v624_v31 = vrot.slane %v623_v29, 1  ;;  %v634_v32 = vadd.f32 %v633_v30, %v632_v28  ;;  %2352 = vmatprep.subr.bf16.mxu1 %v2351_v54  ;;  %v965_v55 = vld [vmem:[#allocation7 + $0xa0] sm:$0xff]  ;;  %v967_v61 = vld [vmem:[#allocation7 + $0xb0] sm:$0xff]  ;;  %v968_v62 = vld [vmem:[#allocation7 + $0xb8] sm:$0xff] }
  0xe6   : > { %v1177_v3 = vld [vmem:[#allocation8] sm:$0xff]  ;;  %v1182_v11 = vld [vmem:[#allocation8 + $0x28] sm:$0xff] }
  0xe7   : > { %2326 = vmatpush3.bf16.msra.mxu0 %v2325_v26  ;;  %v625_v33 = vadd.f32 %v624_v31, %v623_v29  ;;  %v635_v34 = vrot.slane %v634_v32, 1 }
  0xe8   : > { %2328 = vmatprep.subr.bf16.mxu0 %v2327_v40  ;;  %2354 = vmatpush3.bf16.msra.mxu1 %v2351_v54  ;;  %v2383_v54 = vpack.c.bf16 %v1056_v48, %v1055_v47 }
  0xe9   : > { %v636_v35 = vadd.f32 %v635_v34, %v634_v32  ;;  %2356 = vmatprep.subr.bf16.mxu1 %v2355_v60 }
  0xeb   : > { %v638_v36 = vsel %vm637_vm2, %v625_v33, %v636_v35 }
  0xec   : > { %2097 = vmatmul.mubr.msk.f32.vlgmr.msra.gmra.mrb[0].mxu0 %vm616_vm1, %v638_v36  ;;  %2358 = vmatpush3.bf16.msra.mxu1 %v2355_v60  ;;  %v1053_v36 = vld [vmem:[#allocation13 + $0x10] sm:$0xff] }
  0xed   : > { %2330 = vmatpush3.bf16.msra.mxu0 %v2327_v40  ;;  %2360 = vmatprep.subr.bf16.mxu1 %v3359_v4  ;;  %v2379_v42 = vpack.c.bf16 %v1054_v37, %v1053_v36  ;;  %v1359_v36 = vld [vmem:[#allocation10 + $0x38] sm:$0xff] }
  0xee   : > { %2332 = vmatprep.subr.bf16.mxu0 %v2331_v45 }
  0xf1   : > { %2334 = vmatpush3.bf16.msra.mxu0 %v2331_v45 }
  0xf2   : > { %2336 = vmatprep.subr.bf16.mxu0 %v2335_v53 }
  0xf5   : > { %2338 = vmatpush3.bf16.msra.mxu0 %v2335_v53 }
  0xf6   : > { %2340 = vmatprep.subr.bf16.mxu0 %v2339_v59 }
  0xf9   : > { %2342 = vmatpush3.bf16.msra.mxu0 %v2339_v59  ;;  %v1058_v59 = vld [vmem:[#allocation13 + $0x38] sm:$0xff] }
  0xfa   : > { %2376 = vmatprep.subr.bf16.mxu0 %v2375_v63  ;;  %v2387_v60 = vpack.c.bf16 %v1058_v59, %v1057_v58 }
 0x1bf   : > { %v716_v5 = vpop.f32.mrb[0].mxu0 }
 0x1c0   : > { %v720_v6 = vmul.f32 %v716_v5, %v716_v5  ;;  %v2098_v8 = vpop.f32.mrb[1].mxu0  ;;  %v728_v16 = vrot.slane %v716_v5, %v3365_v15 }
 0x1c1   : > { %v1180_v8 = vld [vmem:[#allocation8 + $0x18] sm:$0xff] }
 0x1c2   : > { %v722_v10 = vrot.slane %v720_v6, 7  ;;  %v729_v19 = vsub.f32 %v3340_v7, %v728_v16  ;;  %v730_v20 = vsub.f32 %v3342_v9, %v728_v16 }
 0x1c4   : > { %v724_v12 = vsub.f32 %v716_v5, %v722_v10  ;;  %v1179_v5 = vld [vmem:[#allocation8 + $0x10] sm:$0xff] }
 0x1c5   : > { %v2395_v10 = vpack.c.bf16 %v1180_v8, %v1179_v5 }
 0x1c6   : > { %v731_v13 = vadd.f32 1e-05, %v724_v12 }
 0x1c8   : > { %2643 = vrsqrt.f32 %v731_v13  ;;  %v1183_v13 = vld [vmem:[#allocation8 + $0x30] sm:$0xff] }
 0x1d2   : > { %v2644_v18 = vpop.eup %2643 }
 0x1d3   : > { %v736_v21 = vrot.slane %v2644_v18, %v3369_v17  ;;  %v1185_v18 = vld [vmem:[#allocation8 + $0x40] sm:$0xff] }
 0x1d5   : > { %v737_v23 = vmul.f32 %v736_v21, %v729_v19  ;;  %v738_v24 = vmul.f32 %v736_v21, %v730_v20  ;;  %v1186_v19 = vld [vmem:[#allocation8 + $0x48] sm:$0xff]  ;;  %v1187_v21 = vld [vmem:[#allocation8 + $0x50] sm:$0xff] }
 0x1d6   : > { %v2404_v20 = vpack.c.bf16 %v1186_v19, %v1185_v18 }
 0x1d7   : > { %v746_v26 = vmul.f32 %v1930_v22, %v737_v23  ;;  %v747_v27 = vmul.f32 %v1930_v22, %v738_v24  ;;  %v1188_v22 = vld [vmem:[#allocation8 + $0x58] sm:$0xff]  ;;  %v1189_v24 = vld [vmem:[#allocation8 + $0x60] sm:$0xff] }
 0x1d8   : > { %v2407_v23 = vpack.c.bf16 %v1188_v22, %v1187_v21 }
 0x1d9   : > { %v755_v28 = vadd.f32 %v1931_v25, %v746_v26  ;;  %v756_v29 = vadd.f32 %v1931_v25, %v747_v27  ;;  %v1190_v25 = vld [vmem:[#allocation8 + $0x68] sm:$0xff]  ;;  %v1191_v27 = vld [vmem:[#allocation8 + $0x70] sm:$0xff] }
 0x1da   : > { %v2410_v26 = vpack.c.bf16 %v1190_v25, %v1189_v24 }
 0x1db   : > { %v1932_v30 = vmul.f32 -1.442695, %v755_v28  ;;  %v1933_v31 = vmul.f32 -1.442695, %v756_v29 }
 0x1dd   : > { %2645 = vpow2.f32 %v1932_v30  ;;  %v1353_v30 = vld [vmem:[#allocation10 + $0x8] sm:$0xff] }
 0x1de   : > { %2647 = vpow2.f32 %v1933_v31  ;;  %v1355_v31 = vld [vmem:[#allocation10 + $0x18] sm:$0xff] }
 0x1e7   : > { %v2646_v32 = vpop.eup %2645 }
 0x1e8   : > { %v2648_v33 = vpop.eup %2647  ;;  %v763_v34 = vadd.f32 1.0, %v2646_v32  ;;  %v1352_v32 = vld [vmem:[#allocation10] sm:$0xff] }
 0x1e9   : > { %v764_v35 = vadd.f32 1.0, %v2648_v33  ;;  %v2415_v33 = vpack.c.bf16 %v1355_v31, %v1353_v30  ;;  %v1485_v30 = vld [vmem:[#allocation11 + $0x80] sm:$0xff]  ;;  %v1486_v31 = vld [vmem:[#allocation11 + $0x88] sm:$0xff] }
 0x1ea   : > { %2649 = vrcp.f32 %v763_v34  ;;  %v1354_v34 = vld [vmem:[#allocation10 + $0x10] sm:$0xff] }
 0x1eb   : > { %2651 = vrcp.f32 %v764_v35  ;;  %v1357_v35 = vld [vmem:[#allocation10 + $0x28] sm:$0xff]  ;;  %v2417_v37 = vpack.c.bf16 %v1354_v34, %v1352_v32  ;;  %v1468_v32 = vld [vmem:[#allocation11] sm:$0xff] }
 0x1ec   : > { %v1469_v34 = vld [vmem:[#allocation11 + $0x8] sm:$0xff] }
 0x1f4   : > { %v2650_v38 = vpop.eup %2649 }
 0x1f5   : > { %v2652_v39 = vpop.eup %2651  ;;  %v769_v40 = vmul.f32 %v2650_v38, %v755_v28  ;;  %v1192_v28 = vld [vmem:[#allocation8 + $0x78] sm:$0xff]  ;;  %v2419_v38 = vpack.c.bf16 %v1359_v36, %v1357_v35  ;;  %v1487_v35 = vld [vmem:[#allocation11 + $0x90] sm:$0xff] }
 0x1f6   : > { %v770_v41 = vmul.f32 %v2652_v39, %v756_v29  ;;  %v2413_v29 = vpack.c.bf16 %v1192_v28, %v1191_v27  ;;  %v1356_v39 = vld [vmem:[#allocation10 + $0x20] sm:$0xff]  ;;  %v1488_v36 = vld [vmem:[#allocation11 + $0x98] sm:$0xff] }
 0x1f7   : > { %2115 = vmatprep.mubr.msk.f32.mxu0 %vm616_vm1, %v769_v40  ;;  %v773_v45 = vrot.slane %v769_v40, 7  ;;  %v955_v46 = vrot.slane %v769_v40, 1  ;;  %v1358_v40 = vld [vmem:[#allocation10 + $0x30] sm:$0xff] }
 0x1f8   : > { %2116 = vmatmul.mubr.msk.f32.vlgmr.msra.gmra.mrb[2].mxu0 %vm616_vm1, %v770_v41  ;;  %v774_v49 = vrot.slane %v770_v41, 7  ;;  %v956_v50 = vrot.slane %v770_v41, 1  ;;  %v2421_v41 = vpack.c.bf16 %v1358_v40, %v1356_v39  ;;  %v1470_v39 = vld [vmem:[#allocation11 + $0x10] sm:$0xff]  ;;  %v1471_v40 = vld [vmem:[#allocation11 + $0x18] sm:$0xff] }
 0x1f9   : > { %2378 = vmatpush3.bf16.msra.mxu0 %v2375_v63  ;;  %v777_v51 = vsel %vm637_vm2, 0.0, %v773_v45  ;;  %2172 = vmatprep.mubr.msk.f32.mxu0 %vm616_vm1, %v3340_v7  ;;  %v2367_v7 = vpack.c.bf16 %v966_v56, %v965_v55  ;;  %v2371_v63 = vpack.c.bf16 %v968_v62, %v967_v61 }
 0x1fa   : > { %2134 = vmatprep.mubr.msk.f32.mxu1 %vm616_vm1, %v777_v51  ;;  %v775_v53 = vsel %vm637_vm2, %v773_v45, %v774_v49  ;;  %2380 = vmatprep.subr.bf16.mxu0 %v2379_v42  ;;  %v957_v57 = vsel %vm954_vm3, %v955_v46, %v956_v50  ;;  %v959_v2 = vsel %vm954_vm3, %v956_v50, 0.0 }
 0x1fb   : > { %2135 = vmatmul.mubr.msk.f32.vlgmr.msra.gmra.mrb[0].mxu1 %vm616_vm1, %v775_v53 }
 0x1fc   : > { %2362 = vmatpush3.bf16.msra.mxu1 %v3359_v4  ;;  %2153 = vmatprep.mubr.msk.f32.mxu1 %vm616_vm1, %v957_v57  ;;  %v1178_v4 = vld [vmem:[#allocation8 + $0x8] sm:$0xff] }
 0x1fd   : > { %2382 = vmatpush3.bf16.msra.mxu0 %v2379_v42  ;;  %2364 = vmatprep.subr.bf16.mxu1 %v2363_v52  ;;  %v2392_v6 = vpack.c.bf16 %v1178_v4, %v1177_v3 }
 0x1fe   : > { %2384 = vmatprep.subr.bf16.mxu0 %v2383_v54 }
 0x200   : > { %2366 = vmatpush3.bf16.msra.mxu1 %v2363_v52 }
 0x201   : > { %2386 = vmatpush3.bf16.msra.mxu0 %v2383_v54  ;;  %2368 = vmatprep.subr.bf16.mxu1 %v2367_v7 }
 0x202   : > { %2388 = vmatprep.subr.bf16.mxu0 %v2387_v60 }
 0x204   : > { %2370 = vmatpush3.bf16.msra.mxu1 %v2367_v7 }
 0x205   : > { %2390 = vmatpush3.bf16.msra.mxu0 %v2387_v60  ;;  %2372 = vmatprep.subr.bf16.mxu1 %v2371_v63 }
 0x206   : > { %2391 = vmatprep.subr.bf16.mxu0 %v2956_v0 }
 0x208   : > { %2374 = vmatpush3.bf16.msra.mxu1 %v2371_v63  ;;  %2173 = vmatmul.mubr.msk.f32.vlgmr.msra.gmra.mrb[4].mxu0 %vm616_vm1, %v3342_v9  ;;  %v1181_v9 = vld [vmem:[#allocation8 + $0x20] sm:$0xff] }
 0x209   : > { %2207 = vmatprep.mubr.msk.f32.mxu0 %vm2957_vm0, %v2958_v1  ;;  %2393 = vmatpush3.bf16.msra.mxu0 %v2392_v6  ;;  %v2398_v12 = vpack.c.bf16 %v1182_v11, %v1181_v9 }
 0x20a   : > { %2394 = vmatprep.subr.bf16.mxu0 %v2956_v0  ;;  %2416 = vmatprep.subr.bf16.mxu1 %v2415_v33  ;;  %v2423_v33 = vpack.c.bf16 %v1486_v31, %v1485_v30 }
 0x20b   : > { %2154 = vmatmul.mubr.msk.f32.vlgmr.msra.gmra.mrb[0].mxu1 %vm616_vm1, %v959_v2 }
 0x20c   : > { %1440 = vmatprep.mubr.f32.mxu1 %v2958_v1  ;;  %v1184_v1 = vld [vmem:[#allocation8 + $0x38] sm:$0xff]  ;;  %2418 = vmatpush1.bf16.msra.mxu1 %v2417_v37  ;;  %v2455_v37 = vpack.c.bf16 %v1469_v34, %v1468_v32 }
 0x20d   : > { %2396 = vmatpush3.bf16.msra.mxu0 %v2395_v10  ;;  %v2401_v16 = vpack.c.bf16 %v1184_v1, %v1183_v13  ;;  %2420 = vmatprep.subr.bf16.mxu1 %v2419_v38  ;;  %v2427_v38 = vpack.c.bf16 %v1488_v36, %v1487_v35 }
 0x20e   : > { %2397 = vmatprep.subr.bf16.mxu0 %v2956_v0 }
 0x210   : > { %2422 = vmatpush1.bf16.msra.mxu1 %v2421_v41  ;;  %v1489_v41 = vld [vmem:[#allocation11 + $0xa0] sm:$0xff] }
 0x211   : > { %2399 = vmatpush3.bf16.msra.mxu0 %v2398_v12  ;;  %2456 = vmatprep.subr.bf16.mxu1 %v2455_v37 }
 0x212   : > { %2400 = vmatprep.subr.bf16.mxu0 %v2956_v0 }
 0x215   : > { %2402 = vmatpush3.bf16.msra.mxu0 %v2401_v16 }
 0x216   : > { %2403 = vmatprep.subr.bf16.mxu0 %v2956_v0 }
 0x219   : > { %2405 = vmatpush3.bf16.msra.mxu0 %v2404_v20 }
 0x21a   : > { %2406 = vmatprep.subr.bf16.mxu0 %v2956_v0 }
 0x21d   : > { %2408 = vmatpush3.bf16.msra.mxu0 %v2407_v23 }
 0x21e   : > { %2409 = vmatprep.subr.bf16.mxu0 %v2956_v0 }
 0x221   : > { %2411 = vmatpush3.bf16.msra.mxu0 %v2410_v26 }
 0x222   : > { %2412 = vmatprep.subr.bf16.mxu0 %v2956_v0  ;;  %v1344_v0 = vld [vmem:[%s613_s15] sm:$0x1]  ;;  %s3585_s15 = sld [smem:[#allocation25_spill]] }
 0x223   : > { %v1948_v42 = vmul.f32 -1.442695, %v1344_v0 }
 0x225   : > { %2414 = vmatpush3.bf16.msra.mxu0 %v2413_v29  ;;  %2653 = vpow2.f32 %v1948_v42  ;;  %v1490_v42 = vld [vmem:[#allocation11 + $0xa8] sm:$0xff] }
 0x226   : > { %2424 = vmatprep.subr.bf16.mxu0 %v2423_v33 }
 0x22f   : > { %v2654_v43 = vpop.eup %2653 }
 0x230   : > { %v1348_v44 = vadd.f32 1.0, %v2654_v43  ;;  %v1472_v43 = vld [vmem:[#allocation11 + $0x20] sm:$0xff] }
 0x232   : > { %2655 = vrcp.f32 %v1348_v44  ;;  %v1473_v44 = vld [vmem:[#allocation11 + $0x28] sm:$0xff] }
 0x23c   : > { %v2656_v45 = vpop.eup %2655 }
 0x23d   : > { %v1351_v46 = vmul.f32 %v2656_v45, %v1344_v0  ;;  %v2459_v0 = vpack.c.bf16 %v1471_v40, %v1470_v39  ;;  %v2431_v45 = vpack.c.bf16 %v1490_v42, %v1489_v41 }
 0x23f   : > { %1949 = vmatmul.mubr.msk.f32.vlgmr.msra.gmra.mrb[2].mxu1 %vm1372_vm4, %v1351_v46  ;;  %v2463_v46 = vpack.c.bf16 %v1473_v44, %v1472_v43 }
 0x240   : > { %2458 = vmatpush3.bf16.msra.mxu1 %v2455_v37  ;;  %v1322_v37 = vsub.s32 3, %v3362_v14 }
 0x241   : > { %2460 = vmatprep.subr.bf16.mxu1 %v2459_v0 }
 0x244   : > { %2462 = vmatpush3.bf16.msra.mxu1 %v2459_v0 }
 0x245   : > { %2464 = vmatprep.subr.bf16.mxu1 %v2463_v46 }
 0x248   : > { %2466 = vmatpush3.bf16.msra.mxu1 %v2463_v46 }
 0x2cb   : > { %v2117_v47 = vpop.f32.mrb[2].mxu0 }
 0x2cc   : > { %v865_v48 = vpop.f32.mrb[3].mxu0 }
 0x2db   : > { %v3411_v49 = vpop.f32.mrb[4].mxu0 }
 0x2dc   : > { %v1164_v50 = vmul.f32 %v3411_v49, %v3411_v49  ;;  %v3415_v51 = vpop.f32.mrb[5].mxu0 }
 0x2dd   : > { %v1156_v52 = vadd.f32 %v3411_v49, %v3415_v51  ;;  %v1163_v53 = vmul.f32 %v3415_v51, %v3415_v51 }
 0x2de   : > { %v2155_v54 = vpop.f32.mrb[0].mxu1 }
 0x2df   : > { %v1157_v55 = vrot.slane %v1156_v52, 4  ;;  %v1165_v56 = vadd.f32 %v1164_v50, %v1163_v53  ;;  %v3421_v57 = vadd.f32 %v2155_v54, %v2117_v47  ;;  %v1040_v58 = vpop.f32.mrb[1].mxu1  ;;  %v1491_v47 = vld [vmem:[#allocation11 + $0xb0] sm:$0xff] }
 0x2e0   : > { %v3423_v59 = vadd.f32 %v1040_v58, %v865_v48  ;;  %v1492_v48 = vld [vmem:[#allocation11 + $0xb8] sm:$0xff]  ;;  %v1474_v50 = vld [vmem:[#allocation11 + $0x30] sm:$0xff]  ;;  %v1476_v58 = vld [vmem:[#allocation11 + $0x40] sm:$0xff] }
 0x2e1   : > { %v1158_v7 = vadd.f32 %v1157_v55, %v1156_v52  ;;  %v1166_v60 = vrot.slane %v1165_v56, 4  ;;  %v1148_v61 = vmul.f32 %v3421_v57, %v3421_v57  ;;  %v1475_v52 = vld [vmem:[#allocation11 + $0x38] sm:$0xff]  ;;  %v2435_v53 = vpack.c.bf16 %v1492_v48, %v1491_v47  ;;  %v1493_v55 = vld [vmem:[#allocation11 + $0xc0] sm:$0xff] }
 0x2e2   : > { %v1140_v62 = vadd.f32 %v3423_v59, %v3421_v57  ;;  %v1147_v63 = vmul.f32 %v3423_v59, %v3423_v59  ;;  %v2467_v54 = vpack.c.bf16 %v1475_v52, %v1474_v50  ;;  %v1360_v50 = vld [vmem:[%s3584_s4] sm:$0x3]  ;;  %s3587_s4 = sld [smem:[#allocation27_spill]] }
 0x2e3   : > { %v1167_v2 = vadd.f32 %v1166_v60, %v1165_v56  ;;  %v1159_v5 = vrot.slane %v1158_v7, 2  ;;  %v1494_v56 = vld [vmem:[#allocation11 + $0xc8] sm:$0xff] }
 0x2e4   : > { %v1141_v3 = vrot.slane %v1140_v62, 4  ;;  %v1149_v4 = vadd.f32 %v1148_v61, %v1147_v63  ;;  %v2439_v60 = vpack.c.bf16 %v1494_v56, %v1493_v55  ;;  %2468 = vmatprep.subr.bf16.mxu1 %v2467_v54  ;;  %v1496_v63 = vld [vmem:[#allocation11 + $0xd8] sm:$0xff] }
 0x2e5   : > { %v1168_v6 = vrot.slane %v1167_v2, 2  ;;  %v1160_v12 = vadd.f32 %v1159_v5, %v1158_v7  ;;  %v1477_v7 = vld [vmem:[#allocation11 + $0x48] sm:$0xff]  ;;  %2470 = vmatpush3.bf16.msra.mxu1 %v2467_v54 }
 0x2e6   : > { %v1142_v8 = vadd.f32 %v1141_v3, %v1140_v62  ;;  %v1150_v10 = vrot.slane %v1149_v4, 4  ;;  %v2471_v61 = vpack.c.bf16 %v1477_v7, %v1476_v58  ;;  %v1495_v62 = vld [vmem:[#allocation11 + $0xd0] sm:$0xff] }
 0x2e7   : > { %v1169_v13 = vadd.f32 %v1168_v6, %v1167_v2  ;;  %v1161_v20 = vrot.slane %v1160_v12, 1  ;;  %v2443_v2 = vpack.c.bf16 %v1496_v63, %v1495_v62  ;;  %v1478_v3 = vld [vmem:[#allocation11 + $0x50] sm:$0xff] }
 0x2e8   : > { %v1143_v9 = vrot.slane %v1142_v8, 2  ;;  %v1151_v11 = vadd.f32 %v1150_v10, %v1149_v4  ;;  %2472 = vmatprep.subr.bf16.mxu1 %v2471_v61  ;;  %v1479_v4 = vld [vmem:[#allocation11 + $0x58] sm:$0xff]  ;;  %v1497_v10 = vld [vmem:[#allocation11 + $0xe0] sm:$0xff] }
 0x2e9   : > { %v1170_v22 = vrot.slane %v1169_v13, 1  ;;  %v1162_v25 = vadd.f32 %v1161_v20, %v1160_v12  ;;  %2474 = vmatpush3.bf16.msra.mxu1 %v2471_v61  ;;  %v2475_v6 = vpack.c.bf16 %v1479_v4, %v1478_v3  ;;  %v1480_v12 = vld [vmem:[#allocation11 + $0x60] sm:$0xff]  ;;  %v1482_v20 = vld [vmem:[#allocation11 + $0x70] sm:$0xff] }
 0x2ea   : > { %v1144_v1 = vadd.f32 %v1143_v9, %v1142_v8  ;;  %v1152_v16 = vrot.slane %v1151_v11, 2  ;;  %v1498_v9 = vld [vmem:[#allocation11 + $0xe8] sm:$0xff] }
 0x2eb   : > { %v1171_v26 = vadd.f32 %v1170_v22, %v1169_v13  ;;  %2476 = vmatprep.subr.bf16.mxu1 %v2475_v6  ;;  %v1481_v13 = vld [vmem:[#allocation11 + $0x68] sm:$0xff] }
 0x2ec   : > { %v1145_v18 = vrot.slane %v1144_v1, 1  ;;  %v1153_v19 = vadd.f32 %v1152_v16, %v1151_v11  ;;  %v2447_v11 = vpack.c.bf16 %v1498_v9, %v1497_v10  ;;  %v1499_v16 = vld [vmem:[#allocation11 + $0xf0] sm:$0xff] }
 0x2ed   : > { %2478 = vmatpush3.bf16.msra.mxu1 %v2475_v6 }
 0x2ee   : > { %v1154_v21 = vrot.slane %v1153_v19, 1  ;;  %v1146_v23 = vadd.f32 %v1145_v18, %v1144_v1  ;;  %v2479_v1 = vpack.c.bf16 %v1481_v13, %v1480_v12  ;;  %v1500_v18 = vld [vmem:[#allocation11 + $0xf8] sm:$0xff] }
 0x2ef   : > { %v1661_v13 = vld [vmem:[#allocation11 + $0x118] sm:$0xff] }
 0x2f0   : > { %v1155_v24 = vadd.f32 %v1154_v21, %v1153_v19  ;;  %2480 = vmatprep.subr.bf16.mxu1 %v2479_v1  ;;  %v2451_v19 = vpack.c.bf16 %v1500_v18, %v1499_v16  ;;  %v1483_v21 = vld [vmem:[#allocation11 + $0x78] sm:$0xff] }
 0x2f1   : > { %2482 = vmatpush3.bf16.msra.mxu1 %v2479_v1  ;;  %v2483_v22 = vpack.c.bf16 %v1483_v21, %v1482_v20  ;;  %v1663_v21 = vld [vmem:[#allocation11 + $0x128] sm:$0xff] }
 0x2f2   : > { %v1172_v27 = vsel %vm637_vm2, %v1146_v23, %v1155_v24  ;;  %v1658_v23 = vld [vmem:[#allocation11 + $0x100] sm:$0xff]  ;;  %v1659_v24 = vld [vmem:[#allocation11 + $0x108] sm:$0xff] }
 0x2f3   : > { %v1174_v28 = vsel %vm1173_vm5, %v1172_v27, %v1162_v25  ;;  %2484 = vmatprep.subr.bf16.mxu1 %v2483_v22  ;;  %v3436_v25 = vpack.c.bf16 %v1659_v24, %v1658_v23  ;;  %v1664_v23 = vld [vmem:[#allocation11 + $0x130] sm:$0xff]  ;;  %v1665_v24 = vld [vmem:[#allocation11 + $0x138] sm:$0xff] }
 0x2f4   : > { %v1176_v29 = vsel %vm1175_vm6, %v1174_v28, %v1171_v26  ;;  %v1316_v26 = vsub.s32 2, %v3362_v14  ;;  %v1943_v14 = vld [vmem:[%s3583_s7] ss:$0 sm:$0xff]  ;;  %s1959_s7 = sshll.u32 %s3063_s24, 8  ;;  %s1756_s24 = scalar_lea.sflag [#allocation4], %s3315_s17 }
 0x2f5   : > { %2208 = vmatmul.mubr.f32.vlgmr.msra.gmra.mrb[6].mxu0 %v1176_v29  ;;  %2486 = vmatpush3.bf16.msra.mxu1 %v2483_v22  ;;  %s3487_s27 = scalar_lea.hbm %s3587_s4, %s1959_s7 }
 0x2f6   : > { %2426 = vmatpush3.bf16.msra.mxu0 %v2423_v33  ;;  %2488 = vmatprep.subr.bf16.mxu1 %v3436_v25 }
 0x2f7   : > { %2428 = vmatprep.subr.bf16.mxu0 %v2427_v38 }
 0x2fa   : > { %2430 = vmatpush3.bf16.msra.mxu0 %v2427_v38 }
 0x2fb   : > { %2432 = vmatprep.subr.bf16.mxu0 %v2431_v45 }
 0x2fe   : > { %2434 = vmatpush3.bf16.msra.mxu0 %v2431_v45 }
 0x2ff   : > { %2436 = vmatprep.subr.bf16.mxu0 %v2435_v53 }
 0x302   : > { %2438 = vmatpush3.bf16.msra.mxu0 %v2435_v53  ;;  %v1365_v53 = vrot.slane %v1360_v50, %v3365_v15 }
 0x303   : > { %2440 = vmatprep.subr.bf16.mxu0 %v2439_v60 }
 0x306   : > { %2442 = vmatpush3.bf16.msra.mxu0 %v2439_v60  ;;  %v1369_v60 = vrot.slane %v1360_v50, %v3369_v17 }
 0x307   : > { %2444 = vmatprep.subr.bf16.mxu0 %v2443_v2 }
 0x30a   : > { %2446 = vmatpush3.bf16.msra.mxu0 %v2443_v2 }
 0x30b   : > { %2448 = vmatprep.subr.bf16.mxu0 %v2447_v11 }
 0x30e   : > { %2450 = vmatpush3.bf16.msra.mxu0 %v2447_v11 }
 0x30f   : > { %2452 = vmatprep.subr.bf16.mxu0 %v2451_v19 }
 0x312   : > { %v3432_v5 = vpop.f32.mrb[2].mxu1  ;;  %2454 = vmatpush3.bf16.msra.mxu0 %v2451_v19 }
 0x313   : > { %v3434_v8 = vpop.f32.mrb[3].mxu1  ;;  %v1443_v58 = vadd.f32 %v3432_v5, %v1365_v53  ;;  %v1660_v5 = vld [vmem:[#allocation11 + $0x110] sm:$0xff] }
 0x314   : > { %v1445_v62 = vadd.f32 %v3434_v8, %v1369_v60  ;;  %v2491_v18 = vpack.c.bf16 %v1661_v13, %v1660_v5 }
 0x315   : > { %v1447_v7 = vadd.f32 1.0, %v1443_v58 }
 0x316   : > { %v1457_v10 = vrot.slane %v1445_v62, %v3365_v15 }
 0x317   : > { %v1451_v61 = vrot.slane %v1447_v7, %v3365_v15 }
 0x3c8   : > { %v1259_v27 = vpop.f32.mrb[6].mxu0 }
 0x3c9   : > { %v1263_v28 = vmul.f32 %v1259_v27, %v1259_v27  ;;  %v1317_v29 = vrot.slane %v1259_v27, %v1316_v26  ;;  %v2209_v30 = vpop.f32.mrb[7].mxu0  ;;  %v1271_v36 = vrot.slane %v1259_v27, %v3365_v15  ;;  %v1662_v15 = vld [vmem:[#allocation11 + $0x120] sm:$0xff]  ;;  %v2499_v26 = vpack.c.bf16 %v1665_v24, %v1664_v23 }
 0x3ca   : > { %v2495_v22 = vpack.c.bf16 %v1663_v21, %v1662_v15  ;;  %v1668_v30 = vld [vmem:[#allocation11 + $0x150] sm:$0xff] }
 0x3cb   : > { %v1265_v31 = vrot.slane %v1263_v28, 7  ;;  %v1318_v32 = vsub.f32 %v3415_v51, %v1317_v29  ;;  %v1319_v33 = vsub.f32 %v3411_v49, %v1317_v29  ;;  %v1272_v39 = vsub.f32 %v3423_v59, %v1271_v36  ;;  %v1942_v51 = vld [vmem:[%s3582_s1] ss:$0 sm:$0xff]  ;;  %v1667_v28 = vld [vmem:[#allocation11 + $0x148] sm:$0xff]  ;;  %s3586_s1 = sld [smem:[#allocation26_spill]] }
 0x3cc   : > { %v1273_v40 = vsub.f32 %v3421_v57, %v1271_v36  ;;  %v1673_v36 = vld [vmem:[#allocation11 + $0x178] sm:$0xff] }
 0x3cd   : > { %v1267_v34 = vsub.f32 %v1259_v27, %v1265_v31  ;;  %v1666_v27 = vld [vmem:[#allocation11 + $0x140] sm:$0xff]  ;;  %v1669_v31 = vld [vmem:[#allocation11 + $0x158] sm:$0xff] }
 0x3ce   : > { %v2503_v29 = vpack.c.bf16 %v1667_v28, %v1666_v27 }
 0x3cf   : > { %v1274_v35 = vadd.f32 1e-05, %v1267_v34 }
 0x3d1   : > { %2657 = vrsqrt.f32 %v1274_v35  ;;  %v1672_v35 = vld [vmem:[#allocation11 + $0x170] sm:$0xff] }
 0x3db   : > { %v2658_v38 = vpop.eup %2657 }
 0x3dc   : > { %v1279_v41 = vrot.slane %v2658_v38, %v3369_v17  ;;  %v1323_v0 = vrot.slane %v2658_v38, %v1322_v37  ;;  %v2515_v37 = vpack.c.bf16 %v1673_v36, %v1672_v35 }
 0x3de   : > { %v1280_v49 = vmul.f32 %v1279_v41, %v1272_v39  ;;  %v1281_v42 = vmul.f32 %v1279_v41, %v1273_v40  ;;  %v3450_v43 = vmul.f32 %v1323_v0, %v1319_v33  ;;  %v3452_v44 = vmul.f32 %v1323_v0, %v1318_v32  ;;  %v1670_v33 = vld [vmem:[#allocation11 + $0x160] sm:$0xff] }
 0x3df   : > { %v2507_v32 = vpack.c.bf16 %v1669_v31, %v1668_v30  ;;  %v1946_v40 = vld [vmem:[%s3585_s15] ss:$0 sm:$0xff]  ;;  %s2869_s15 = sshll.u32 %s2959_s23, 4  ;;  %s2870_s15 = int_to_ptr.vmem [resolvable:$false] %s2869_s15 }
 0x3e0   : > { %v1289_v59 = vmul.f32 %v1942_v51, %v1280_v49  ;;  %v1290_v45 = vmul.f32 %v1942_v51, %v1281_v42  ;;  %v1334_v41 = vmul.f32 %v1946_v40, %v3450_v43  ;;  %v1947_v0 = vld [vmem:[%s3586_s1] ss:$0 sm:$0xff]  ;;  %v1333_v51 = vmul.f32 %v1946_v40, %v3452_v44  ;;  %s2871_s16 = scalar_lea.vmem %s2870_s15, 512  ;;  %p2872_p0 = scmp.lt.s32.totalorder %s3482_s13, %s2870_s15 }
 0x3e1   : > { %p2873_p2 = scmp.lt.s32.totalorder %s2871_s16, %s2865_s28 }
 0x3e2   : > { %v1298_v57 = vadd.f32 %v1943_v14, %v1289_v59  ;;  %v1299_v46 = vadd.f32 %v1943_v14, %v1290_v45  ;;  %v1343_v42 = vadd.f32 %v1947_v0, %v1334_v41  ;;  %v1342_v43 = vadd.f32 %v1947_v0, %v1333_v51 }
 0x3e3   : > { %p2874_p8 = por %p2873_p2, %p2872_p0 }
 0x3e4   : > { %v1944_v47 = vmul.f32 -1.442695, %v1298_v57  ;;  %v1945_v48 = vmul.f32 -1.442695, %v1299_v46 }
 0x3e5   : > { %p2875_p4 = pnand %p2874_p8, %p2868_p13 }
 0x3e6   : > { %2659 = vpow2.f32 %v1944_v47 }
 0x3e7   : > { %2661 = vpow2.f32 %v1945_v48 }
 0x3f0   : > { %v2660_v52 = vpop.eup %2659 }
 0x3f1   : > { %v2662_v54 = vpop.eup %2661  ;;  %v1306_v55 = vadd.f32 1.0, %v2660_v52 }
 0x3f2   : > { %v1307_v56 = vadd.f32 1.0, %v2662_v54 }
 0x3f3   : > { %2663 = vrcp.f32 %v1306_v55 }
 0x3f4   : > { %2665 = vrcp.f32 %v1307_v56 }
 0x3fd   : > { %v2664_v63 = vpop.eup %2663 }
 0x3fe   : > { %v2666_v2 = vpop.eup %2665  ;;  %v1312_v3 = vmul.f32 %v2664_v63, %v1298_v57 }
 0x3ff   : > { %v1313_v4 = vmul.f32 %v2666_v2, %v1299_v46 }
 0x400   : > { %v1452_v6 = vmul.f32 %v1451_v61, %v1312_v3 }
 0x401   : > { %v1453_v9 = vmul.f32 %v1451_v61, %v1313_v4 }
 0x402   : > { %v1458_v11 = vadd.f32 %v1457_v10, %v1452_v6 }
 0x403   : > { %v1459_v12 = vadd.f32 %v1457_v10, %v1453_v9 }
 0x404   : > { %2242 = vmatprep.mubr.f32.mxu0 %v1458_v11  ;;  %v1462_v17 = vrot.slane %v1458_v11, 7  ;;  %v1651_v1 = vrot.slane %v1458_v11, 1 }
 0x405   : > { %2243 = vmatmul.mubr.f32.vlgmr.msra.gmra.mrb[8].mxu0 %v1459_v12  ;;  %v1463_v16 = vrot.slane %v1459_v12, 7  ;;  %v1652_v8 = vrot.slane %v1459_v12, 1 }
 0x406   : > { %2277 = vmatprep.mubr.msk.f32.mxu1 %vm1950_vm7, %v1462_v17 }
 0x407   : > { %v1464_v19 = vsel %vm637_vm2, %v1462_v17, %v1463_v16  ;;  %v1653_v20 = vsel %vm954_vm3, %v1651_v1, %v1652_v8 }
 0x408   : > { %2278 = vmatmul.mubr.f32.vlgmr.msra.gmra.mrb[4].mxu1 %v1464_v19 }
 0x409   : > { %2490 = vmatpush3.bf16.msra.mxu1 %v3436_v25  ;;  %2312 = vmatprep.mubr.f32.mxu1 %v1653_v20  ;;  %v1671_v25 = vld [vmem:[#allocation11 + $0x168] sm:$0xff] }
 0x40a   : > { %2492 = vmatprep.subr.bf16.mxu1 %v2491_v18  ;;  %v2511_v34 = vpack.c.bf16 %v1671_v25, %v1670_v33 }
 0x40d   : > { %2494 = vmatpush3.bf16.msra.mxu1 %v2491_v18 }
 0x40e   : > { %2496 = vmatprep.subr.bf16.mxu1 %v2495_v22 }
 0x411   : > { %2498 = vmatpush3.bf16.msra.mxu1 %v2495_v22 }
 0x412   : > { %2500 = vmatprep.subr.bf16.mxu1 %v2499_v26 }
 0x415   : > { %2502 = vmatpush3.bf16.msra.mxu1 %v2499_v26 }
 0x416   : > { %2504 = vmatprep.subr.bf16.mxu1 %v2503_v29 }
 0x419   : > { %2506 = vmatpush3.bf16.msra.mxu1 %v2503_v29 }
 0x41a   : > { %2508 = vmatprep.subr.bf16.mxu1 %v2507_v32 }
 0x41d   : > { %2510 = vmatpush3.bf16.msra.mxu1 %v2507_v32 }
 0x41e   : > { %2512 = vmatprep.subr.bf16.mxu1 %v2511_v34 }
 0x421   : > { %2514 = vmatpush3.bf16.msra.mxu1 %v2511_v34 }
 0x422   : > { %2516 = vmatprep.subr.bf16.mxu1 %v2515_v37 }
 0x425   : > { %2518 = vmatpush3.bf16.msra.mxu1 %v2515_v37 }
 0x428   : > { %2313 = vmatmul.mubr.msk.f32.vlgmr.msra.gmra.mrb[4].mxu1 %vm954_vm3, %v1652_v8 }
 0x4d8   : > { %v2244_v38 = vpop.f32.mrb[8].mxu0 }
 0x4d9   : > { %v1567_v39 = vpop.f32.mrb[9].mxu0 }
 0x4fb   : > { %v2314_v49 = vpop.f32.mrb[4].mxu1 }
 0x4fc   : > { %v2521_v14 = vadd.f32 %v2314_v49, %v2244_v38  ;;  %v1740_v59 = vpop.f32.mrb[5].mxu1 }
 0x4fd   : > { %v2522_v45 = vadd.f32 %v1740_v59, %v1567_v39 }
 0x4fe   : > { %v1752_v57 = vadd.f32 %v2521_v14, %v1343_v42 }
 0x4ff   : > { %v1751_v44 = vadd.f32 %v2522_v45, %v1342_v43 }
 0x500   : > { %1754 = vst [vmem:[%s610_s25 + $0x8] sm:$0xff] %v1752_v57 }
 0x501   : > { %1753 = vst [vmem:[%s610_s25] sm:$0xff] %v1751_v44 }
 0x502   : > { %2878 = shalt.err (!%p2875_p4)
}
 0x503   : > { %s2879_s22 = scalar_lea.hbm %s3487_s27, 256  ;;  %s2883_s7 = scalar_lea.hbm %s3587_s4, 512 }
 0x504   : > { %p2880_p10 = scmp.ne.s32.totalorder %s3487_s27, %s2879_s22  ;;  %p2884_p5 = scmp.lt.u32.totalorder %s3487_s27, %s3587_s4 }
 0x505   : > { %p2885_p7 = scmp.lt.u32.totalorder %s2883_s7, %s2879_s22  ;;  %p2887_p9 = scmp.lt.u32.totalorder %s2879_s22, %s3487_s27 }
 0x506   : > { %p2881_p11 = pnand %p2880_p10, %p3588_p12 }
 0x507   : > { %p2886_p6 = por %p2885_p7, %p2884_p5 }
 0x508   : > { %p2882_p3 = pneg %p2881_p11 }
 0x509   : > { %p2888_p1 = por %p2887_p9, %p2886_p6 }
 0x50b   : > { %p2889_p13 = pnand %p2888_p1, %p2882_p3 }
 0x50d   : > { %2892 = shalt.err (!%p2889_p13)
}
 0x50e   : > { %s2960_s28 = smov 128   ;;  %s2961_s23 = smov 8  }
 0x50f   : > { %2553 = dma.vmem_to_hbm [thread:$0]  (%p3588_p12), %s3482_s13, 256, %s3487_s27, %s1756_s24, %s2960_s28, %s2960_s28, %s2961_s23  }
 0x510 PF: > { %s1784_s15 = sand.u32 1, %s2931_s18   ;;  %p3589_p0 = scmp.ne.s32.totalorder %s3571_s14, 0 }
 0x511   : > { %p3590_p2 = scmp.ge.s32.totalorder %s2943_s21, 2  ;;  %s1785_s16 = scalar_lea.sflag [#allocation4], %s1784_s15 }
 0x513   : > { %p2579_p8 = pnand %p3590_p2, %p3589_p0 }
 0x515   : > { %2926 = dma.done.wait (!%p2579_p8), %s1785_s16, 256  }
 0x516   : > { %2928 = vsyncadd (!%p2579_p8), %s1785_s16, 4294967040  ;;  %p31_p4 = scmp.ge.s32.totalorder %s3233_s26, 4   ;;  %s3591_s18 = smov %s2935_s19 }
 0x517   : > { %s3592_s19 = smov %s2939_s20  ;;  %s3593_s20 = smov %s3244_s6 }
 0x518   : > { %s3594_s21 = smov %s3233_s26  ;;  %33 = sbr.rel (!%p31_p4) target bundleno = 17 (0x11), region = 156 }
 0x51f   :  { %1790 = vsyncpa [#allocation3], 1 }
 0x520   :  { %1792 = vsyncpa [#allocation3 + $0x1], 1 }
 0x521   :  { %1793 = vsyncpa [#allocation6], 1 }
 0x522   :  { %1794 = vsyncpa [#allocation9], 1 }
 0x523   :  { %1795 = vsyncpa [#allocation12], 1 }
 0x524   :  { %1796 = vsyncpa [#allocation4], 1 }
 0x525   :  { %1798 = vsyncpa [#allocation4 + $0x1], 1 }

</bundles_post_ra>
